<compile_context>
chip_gen: v5e
topology: v5e:2x2
jax: 0.10.0
libtpu: 0.0.40
codegen_flags: <defaults>
</compile_context>

<pallas_src>
import jax
import jax.numpy as jnp
import numpy as np
from jax.experimental import pallas as pl
from jax.experimental.pallas import tpu as pltpu

IN_C = 4          # input_channels
OUT_C = 8         # output_channels
DOWN = 2          # down_size (AvgPool2d kernel == stride)
NEG_SLOPE = 0.01  # torch.nn.LeakyReLU default negative_slope
BN_EPS = 1e-5     # torch.nn.BatchNorm2d default eps

# TODO(synk): dropout branch not implemented — the module is used with dropout=False.
# TODO(synk): BatchNorm running-stats update (training-time side effect) is not
#             replicated; the output uses training-mode batch statistics
#             (biased variance), exactly like PyTorch's training forward.


def _lrelu(x):
    return jnp.where(x >= 0, x, NEG_SLOPE * x)


def down_block_bn_kernel(x_ref, g_ref, w1_ref, b1_ref, w21a_ref, w21b_ref,
                         b21_ref, w22_ref, b22_ref, w31a_ref, w31b_ref,
                         w31c_ref, b31_ref, w32_ref, b32_ref, gamma_ref,
                         beta_ref, out_ref):
    x = x_ref[...]                                            # (IN_C, P)

    def conv3x3(a, wt_ref, b_ref):
        # a: (C, P); wt_ref: (9, OUT_C, C) per-tap weights; g_ref: (9, P, P)
        # 0/1 shift-select operators.  out = sum_d (W_d @ a) @ S_d + b.
        acc = None
        for d in range(9):
            wa = jnp.dot(wt_ref[d], a, preferred_element_type=jnp.float32)
            term = jnp.dot(wa, g_ref[d], preferred_element_type=jnp.float32)
            acc = term if acc is None else acc + term
        return acc + b_ref[...]

    # x1 = LeakyReLU(conv1(x))
    x1 = _lrelu(conv3x3(x, w1_ref, b1_ref))

    # x21 = cat(x, x1); conv21 is 1x1 -> concat folded into split weights.
    u = (jnp.dot(w21a_ref[...], x, preferred_element_type=jnp.float32)
         + jnp.dot(w21b_ref[...], x1, preferred_element_type=jnp.float32)
         + b21_ref[...])
    x22 = _lrelu(conv3x3(u, w22_ref, b22_ref))

    # x31 = cat(x, x1, x22); conv31 is 1x1 -> split weights again.
    v = (jnp.dot(w31a_ref[...], x, preferred_element_type=jnp.float32)
         + jnp.dot(w31b_ref[...], x1, preferred_element_type=jnp.float32)
         + jnp.dot(w31c_ref[...], x22, preferred_element_type=jnp.float32)
         + b31_ref[...])
    out = _lrelu(conv3x3(v, w32_ref, b32_ref))                # (OUT_C, P)

    # Fused BatchNorm2d (training-mode batch stats, biased variance); two-pass
    # form so the variance can never go negative.
    mean = jnp.mean(out, axis=1, keepdims=True)
    cent = out - mean
    var = jnp.mean(cent * cent, axis=1, keepdims=True)
    inv = jax.lax.rsqrt(var + BN_EPS)
    out_ref[...] = (cent * inv * gamma_ref[...] + beta_ref[...]).astype(out_ref.dtype)


def _shift_select_operators(n, h, w):
    """G[d, q, p] = 1 iff pixel q is the (kh, kw)=divmod(d,3) 3x3-tap neighbour
    of pixel p (same image, in-bounds); zero columns implement conv padding."""
    p_tot = n * h * w
    g = np.zeros((9, p_tot, p_tot), np.float32)
    for kh in range(3):
        for kw in range(3):
            d = kh * 3 + kw
            dh, dw = kh - 1, kw - 1
            for ni in range(n):
                for hi in range(h):
                    hh = hi + dh
                    if not (0 <= hh < h):
                        continue
                    for wi in range(w):
                        ww = wi + dw
                        if not (0 <= ww < w):
                            continue
                        p_idx = (ni * h + hi) * w + wi
                        q_idx = (ni * h + hh) * w + ww
                        g[d, q_idx, p_idx] = 1.0
    return jnp.asarray(g)


def densenet2d_down_block(x_nchw, p, down_size=DOWN):
    x = x_nchw.astype(jnp.float32)
    N, _, H, W = x.shape

    # AvgPool2d(kernel_size=down_size) — wrapper glue.
    if down_size is not None:
        Hp, Wp = H // down_size, W // down_size
        x = x.reshape(N, IN_C, Hp, down_size, Wp, down_size).mean(axis=(3, 5))
    else:
        Hp, Wp = H, W
    P = N * Hp * Wp

    # Lane-dense (channels, pixels) activation layout.
    x_flat = jnp.transpose(x, (1, 0, 2, 3)).reshape(IN_C, P)

    g = _shift_select_operators(N, Hp, Wp)                    # (9, P, P)

    # Per-tap 3x3 weights: OIHW -> (9, O, I) with tap index d = kh*3 + kw.
    def per_tap(w_oihw):
        o, i = w_oihw.shape[0], w_oihw.shape[1]
        return jnp.transpose(w_oihw, (2, 3, 0, 1)).reshape(9, o, i)

    w1t, w22t, w32t = per_tap(p["w1"]), per_tap(p["w22"]), per_tap(p["w32"])
    # 1x1 conv weights, split along the concatenated input channels.
    w21 = p["w21"][:, :, 0, 0]
    w31 = p["w31"][:, :, 0, 0]
    w21a, w21b = w21[:, :IN_C], w21[:, IN_C:]
    w31a, w31b, w31c = (w31[:, :IN_C], w31[:, IN_C:IN_C + OUT_C],
                        w31[:, IN_C + OUT_C:])
    col = lambda v: v[:, None]                                # (C,) -> (C, 1)

    args = (x_flat, g,
            w1t, col(p["b1"]), w21a, w21b, col(p["b21"]),
            w22t, col(p["b22"]), w31a, w31b, w31c, col(p["b31"]),
            w32t, col(p["b32"]), col(p["gamma"]), col(p["beta"]))

    vmem = pl.BlockSpec(memory_space=pltpu.MemorySpace.VMEM)
    out_flat = pl.pallas_call(
        down_block_bn_kernel,
        out_shape=jax.ShapeDtypeStruct((OUT_C, P), jnp.float32),
        in_specs=[vmem] * len(args),
        out_specs=vmem,
    )(*args)

    # (OUT_C, N*Hp*Wp) -> NCHW, wrapper glue.
    return jnp.transpose(out_flat.reshape(OUT_C, N, Hp, Wp), (1, 0, 2, 3))


# ------------------------- reference & test harness -------------------------

def ref_forward(x_nchw, p, down_size=DOWN):
    x = x_nchw.astype(jnp.float32)
    if down_size is not None:
        N, C, H, W = x.shape
        x = x.reshape(N, C, H // down_size, down_size,
                      W // down_size, down_size).mean(axis=(3, 5))

    def conv(t, w, b, pad):
        y = jax.lax.conv_general_dilated(t, w, (1, 1), [(pad, pad), (pad, pad)],
                                         dimension_numbers=("NCHW", "OIHW", "NCHW"))
        return y + b[None, :, None, None]

    lrelu = lambda t: jnp.where(t >= 0, t, NEG_SLOPE * t)
    x1 = lrelu(conv(x, p["w1"], p["b1"], 1))
    x21 = jnp.concatenate([x, x1], axis=1)
    x22 = lrelu(conv(conv(x21, p["w21"], p["b21"], 0), p["w22"], p["b22"], 1))
    x31 = jnp.concatenate([x21, x22], axis=1)
    out = lrelu(conv(conv(x31, p["w31"], p["b31"], 0), p["w32"], p["b32"], 1))
    mean = out.mean(axis=(0, 2, 3), keepdims=True)
    cent = out - mean
    var = (cent * cent).mean(axis=(0, 2, 3), keepdims=True)
    return (cent * jax.lax.rsqrt(var + BN_EPS)
            * p["gamma"][None, :, None, None] + p["beta"][None, :, None, None])


def make_params(key):
    def conv_init(k, cin, cout, ks):
        kw_, kb_ = jax.random.split(k)
        w = jax.random.normal(kw_, (cout, cin, ks, ks), jnp.float32) / np.sqrt(cin * ks * ks)
        b = 0.1 * jax.random.normal(kb_, (cout,), jnp.float32)
        return w, b

    ks = jax.random.split(key, 5)
    p = {}
    p["w1"], p["b1"] = conv_init(ks[0], IN_C, OUT_C, 3)
    p["w21"], p["b21"] = conv_init(ks[1], IN_C + OUT_C, OUT_C, 1)
    p["w22"], p["b22"] = conv_init(ks[2], OUT_C, OUT_C, 3)
    p["w31"], p["b31"] = conv_init(ks[3], IN_C + 2 * OUT_C, OUT_C, 1)
    p["w32"], p["b32"] = conv_init(ks[4], OUT_C, OUT_C, 3)
    p["gamma"] = jnp.ones((OUT_C,), jnp.float32)   # BatchNorm2d default init
    p["beta"] = jnp.zeros((OUT_C,), jnp.float32)
    return p


if __name__ == "__main__":
    root = jax.random.PRNGKey(0)
    pkey, xkey = jax.random.split(root)
    params = make_params(pkey)
    x = jax.random.normal(xkey, (2, IN_C, 16, 16), jnp.float32)    # NCHW like PyTorch

    out = jax.block_until_ready(densenet2d_down_block(x, params))
    assert out.shape == (2, OUT_C, 16 // DOWN, 16 // DOWN), out.shape

    ref = jax.block_until_ready(ref_forward(x, params))
    err = float(jnp.max(jnp.abs(out - ref)))
    assert np.allclose(np.asarray(out), np.asarray(ref), rtol=2e-2, atol=2e-2), \
        f"mismatch vs reference, max |err| = {err}"

    print("KERNEL_OK")
</pallas_src>

<mosaic_0001>
module attributes {stable_mosaic.version = 11 : i64} {
  func.func @down_block_bn_kernel(%arg0: memref<4x128xf32, #tpu.memory_space<vmem>>, %arg1: memref<9x128x128xf32, #tpu.memory_space<vmem>>, %arg2: memref<9x8x4xf32, #tpu.memory_space<vmem>>, %arg3: memref<8x1xf32, #tpu.memory_space<vmem>>, %arg4: memref<8x4xf32, #tpu.memory_space<vmem>>, %arg5: memref<8x8xf32, #tpu.memory_space<vmem>>, %arg6: memref<8x1xf32, #tpu.memory_space<vmem>>, %arg7: memref<9x8x8xf32, #tpu.memory_space<vmem>>, %arg8: memref<8x1xf32, #tpu.memory_space<vmem>>, %arg9: memref<8x4xf32, #tpu.memory_space<vmem>>, %arg10: memref<8x8xf32, #tpu.memory_space<vmem>>, %arg11: memref<8x8xf32, #tpu.memory_space<vmem>>, %arg12: memref<8x1xf32, #tpu.memory_space<vmem>>, %arg13: memref<9x8x8xf32, #tpu.memory_space<vmem>>, %arg14: memref<8x1xf32, #tpu.memory_space<vmem>>, %arg15: memref<8x1xf32, #tpu.memory_space<vmem>>, %arg16: memref<8x1xf32, #tpu.memory_space<vmem>>, %arg17: memref<8x128xf32, #tpu.memory_space<vmem>>) attributes {dimension_semantics = [], scalar_prefetch = 0 : i64, scratch_operands = 0 : i64, tpu.core_type = #tpu.core_type<tc>} {
    %c0 = arith.constant 0 : index
    %c0_0 = arith.constant 0 : index
    %0 = vector.load %arg0[%c0, %c0_0] : memref<4x128xf32, #tpu.memory_space<vmem>>, vector<4x128xf32>
    %c0_1 = arith.constant 0 : index
    %c0_2 = arith.constant 0 : index
    %c0_3 = arith.constant 0 : index
    %1 = vector.load %arg2[%c0_1, %c0_2, %c0_3] : memref<9x8x4xf32, #tpu.memory_space<vmem>>, vector<1x8x4xf32>
    %2 = vector.shape_cast %1 : vector<1x8x4xf32> to vector<8x4xf32>
    %cst = arith.constant dense<0.000000e+00> : vector<8x128xf32>
    %3 = tpu.matmul %2, %0, %cst {dimension_numbers = #tpu.dot_dimension_numbers<[1], [0], [0], [1], [0, 0, 1, 1], [], []>} : vector<8x4xf32>, vector<4x128xf32>, vector<8x128xf32> -> vector<8x128xf32>
    %c0_4 = arith.constant 0 : index
    %c0_5 = arith.constant 0 : index
    %c0_6 = arith.constant 0 : index
    %4 = vector.load %arg1[%c0_4, %c0_5, %c0_6] : memref<9x128x128xf32, #tpu.memory_space<vmem>>, vector<1x128x128xf32>
    %5 = vector.shape_cast %4 : vector<1x128x128xf32> to vector<128x128xf32>
    %cst_7 = arith.constant dense<0.000000e+00> : vector<8x128xf32>
    %6 = tpu.matmul %3, %5, %cst_7 {dimension_numbers = #tpu.dot_dimension_numbers<[1], [0], [0], [1], [0, 0, 1, 1], [], []>} : vector<8x128xf32>, vector<128x128xf32>, vector<8x128xf32> -> vector<8x128xf32>
    %c1 = arith.constant 1 : index
    %c0_8 = arith.constant 0 : index
    %c0_9 = arith.constant 0 : index
    %7 = vector.load %arg2[%c1, %c0_8, %c0_9] : memref<9x8x4xf32, #tpu.memory_space<vmem>>, vector<1x8x4xf32>
    %8 = vector.shape_cast %7 : vector<1x8x4xf32> to vector<8x4xf32>
    %cst_10 = arith.constant dense<0.000000e+00> : vector<8x128xf32>
    %9 = tpu.matmul %8, %0, %cst_10 {dimension_numbers = #tpu.dot_dimension_numbers<[1], [0], [0], [1], [0, 0, 1, 1], [], []>} : vector<8x4xf32>, vector<4x128xf32>, vector<8x128xf32> -> vector<8x128xf32>
    %c1_11 = arith.constant 1 : index
    %c0_12 = arith.constant 0 : index
    %c0_13 = arith.constant 0 : index
    %10 = vector.load %arg1[%c1_11, %c0_12, %c0_13] : memref<9x128x128xf32, #tpu.memory_space<vmem>>, vector<1x128x128xf32>
    %11 = vector.shape_cast %10 : vector<1x128x128xf32> to vector<128x128xf32>
    %cst_14 = arith.constant dense<0.000000e+00> : vector<8x128xf32>
    %12 = tpu.matmul %9, %11, %cst_14 {dimension_numbers = #tpu.dot_dimension_numbers<[1], [0], [0], [1], [0, 0, 1, 1], [], []>} : vector<8x128xf32>, vector<128x128xf32>, vector<8x128xf32> -> vector<8x128xf32>
    %13 = arith.addf %6, %12 : vector<8x128xf32>
    %c2 = arith.constant 2 : index
    %c0_15 = arith.constant 0 : index
    %c0_16 = arith.constant 0 : index
    %14 = vector.load %arg2[%c2, %c0_15, %c0_16] : memref<9x8x4xf32, #tpu.memory_space<vmem>>, vector<1x8x4xf32>
    %15 = vector.shape_cast %14 : vector<1x8x4xf32> to vector<8x4xf32>
    %cst_17 = arith.constant dense<0.000000e+00> : vector<8x128xf32>
    %16 = tpu.matmul %15, %0, %cst_17 {dimension_numbers = #tpu.dot_dimension_numbers<[1], [0], [0], [1], [0, 0, 1, 1], [], []>} : vector<8x4xf32>, vector<4x128xf32>, vector<8x128xf32> -> vector<8x128xf32>
    %c2_18 = arith.constant 2 : index
    %c0_19 = arith.constant 0 : index
    %c0_20 = arith.constant 0 : index
    %17 = vector.load %arg1[%c2_18, %c0_19, %c0_20] : memref<9x128x128xf32, #tpu.memory_space<vmem>>, vector<1x128x128xf32>
    %18 = vector.shape_cast %17 : vector<1x128x128xf32> to vector<128x128xf32>
    %cst_21 = arith.constant dense<0.000000e+00> : vector<8x128xf32>
    %19 = tpu.matmul %16, %18, %cst_21 {dimension_numbers = #tpu.dot_dimension_numbers<[1], [0], [0], [1], [0, 0, 1, 1], [], []>} : vector<8x128xf32>, vector<128x128xf32>, vector<8x128xf32> -> vector<8x128xf32>
    %20 = arith.addf %13, %19 : vector<8x128xf32>
    %c3 = arith.constant 3 : index
    %c0_22 = arith.constant 0 : index
    %c0_23 = arith.constant 0 : index
    %21 = vector.load %arg2[%c3, %c0_22, %c0_23] : memref<9x8x4xf32, #tpu.memory_space<vmem>>, vector<1x8x4xf32>
    %22 = vector.shape_cast %21 : vector<1x8x4xf32> to vector<8x4xf32>
    %cst_24 = arith.constant dense<0.000000e+00> : vector<8x128xf32>
    %23 = tpu.matmul %22, %0, %cst_24 {dimension_numbers = #tpu.dot_dimension_numbers<[1], [0], [0], [1], [0, 0, 1, 1], [], []>} : vector<8x4xf32>, vector<4x128xf32>, vector<8x128xf32> -> vector<8x128xf32>
    %c3_25 = arith.constant 3 : index
    %c0_26 = arith.constant 0 : index
    %c0_27 = arith.constant 0 : index
    %24 = vector.load %arg1[%c3_25, %c0_26, %c0_27] : memref<9x128x128xf32, #tpu.memory_space<vmem>>, vector<1x128x128xf32>
    %25 = vector.shape_cast %24 : vector<1x128x128xf32> to vector<128x128xf32>
    %cst_28 = arith.constant dense<0.000000e+00> : vector<8x128xf32>
    %26 = tpu.matmul %23, %25, %cst_28 {dimension_numbers = #tpu.dot_dimension_numbers<[1], [0], [0], [1], [0, 0, 1, 1], [], []>} : vector<8x128xf32>, vector<128x128xf32>, vector<8x128xf32> -> vector<8x128xf32>
    %27 = arith.addf %20, %26 : vector<8x128xf32>
    %c4 = arith.constant 4 : index
    %c0_29 = arith.constant 0 : index
    %c0_30 = arith.constant 0 : index
    %28 = vector.load %arg2[%c4, %c0_29, %c0_30] : memref<9x8x4xf32, #tpu.memory_space<vmem>>, vector<1x8x4xf32>
    %29 = vector.shape_cast %28 : vector<1x8x4xf32> to vector<8x4xf32>
    %cst_31 = arith.constant dense<0.000000e+00> : vector<8x128xf32>
    %30 = tpu.matmul %29, %0, %cst_31 {dimension_numbers = #tpu.dot_dimension_numbers<[1], [0], [0], [1], [0, 0, 1, 1], [], []>} : vector<8x4xf32>, vector<4x128xf32>, vector<8x128xf32> -> vector<8x128xf32>
    %c4_32 = arith.constant 4 : index
    %c0_33 = arith.constant 0 : index
    %c0_34 = arith.constant 0 : index
    %31 = vector.load %arg1[%c4_32, %c0_33, %c0_34] : memref<9x128x128xf32, #tpu.memory_space<vmem>>, vector<1x128x128xf32>
    %32 = vector.shape_cast %31 : vector<1x128x128xf32> to vector<128x128xf32>
    %cst_35 = arith.constant dense<0.000000e+00> : vector<8x128xf32>
    %33 = tpu.matmul %30, %32, %cst_35 {dimension_numbers = #tpu.dot_dimension_numbers<[1], [0], [0], [1], [0, 0, 1, 1], [], []>} : vector<8x128xf32>, vector<128x128xf32>, vector<8x128xf32> -> vector<8x128xf32>
    %34 = arith.addf %27, %33 : vector<8x128xf32>
    %c5 = arith.constant 5 : index
    %c0_36 = arith.constant 0 : index
    %c0_37 = arith.constant 0 : index
    %35 = vector.load %arg2[%c5, %c0_36, %c0_37] : memref<9x8x4xf32, #tpu.memory_space<vmem>>, vector<1x8x4xf32>
    %36 = vector.shape_cast %35 : vector<1x8x4xf32> to vector<8x4xf32>
    %cst_38 = arith.constant dense<0.000000e+00> : vector<8x128xf32>
    %37 = tpu.matmul %36, %0, %cst_38 {dimension_numbers = #tpu.dot_dimension_numbers<[1], [0], [0], [1], [0, 0, 1, 1], [], []>} : vector<8x4xf32>, vector<4x128xf32>, vector<8x128xf32> -> vector<8x128xf32>
    %c5_39 = arith.constant 5 : index
    %c0_40 = arith.constant 0 : index
    %c0_41 = arith.constant 0 : index
    %38 = vector.load %arg1[%c5_39, %c0_40, %c0_41] : memref<9x128x128xf32, #tpu.memory_space<vmem>>, vector<1x128x128xf32>
    %39 = vector.shape_cast %38 : vector<1x128x128xf32> to vector<128x128xf32>
    %cst_42 = arith.constant dense<0.000000e+00> : vector<8x128xf32>
    %40 = tpu.matmul %37, %39, %cst_42 {dimension_numbers = #tpu.dot_dimension_numbers<[1], [0], [0], [1], [0, 0, 1, 1], [], []>} : vector<8x128xf32>, vector<128x128xf32>, vector<8x128xf32> -> vector<8x128xf32>
    %41 = arith.addf %34, %40 : vector<8x128xf32>
    %c6 = arith.constant 6 : index
    %c0_43 = arith.constant 0 : index
    %c0_44 = arith.constant 0 : index
    %42 = vector.load %arg2[%c6, %c0_43, %c0_44] : memref<9x8x4xf32, #tpu.memory_space<vmem>>, vector<1x8x4xf32>
    %43 = vector.shape_cast %42 : vector<1x8x4xf32> to vector<8x4xf32>
    %cst_45 = arith.constant dense<0.000000e+00> : vector<8x128xf32>
    %44 = tpu.matmul %43, %0, %cst_45 {dimension_numbers = #tpu.dot_dimension_numbers<[1], [0], [0], [1], [0, 0, 1, 1], [], []>} : vector<8x4xf32>, vector<4x128xf32>, vector<8x128xf32> -> vector<8x128xf32>
    %c6_46 = arith.constant 6 : index
    %c0_47 = arith.constant 0 : index
    %c0_48 = arith.constant 0 : index
    %45 = vector.load %arg1[%c6_46, %c0_47, %c0_48] : memref<9x128x128xf32, #tpu.memory_space<vmem>>, vector<1x128x128xf32>
    %46 = vector.shape_cast %45 : vector<1x128x128xf32> to vector<128x128xf32>
    %cst_49 = arith.constant dense<0.000000e+00> : vector<8x128xf32>
    %47 = tpu.matmul %44, %46, %cst_49 {dimension_numbers = #tpu.dot_dimension_numbers<[1], [0], [0], [1], [0, 0, 1, 1], [], []>} : vector<8x128xf32>, vector<128x128xf32>, vector<8x128xf32> -> vector<8x128xf32>
    %48 = arith.addf %41, %47 : vector<8x128xf32>
    %c7 = arith.constant 7 : index
    %c0_50 = arith.constant 0 : index
    %c0_51 = arith.constant 0 : index
    %49 = vector.load %arg2[%c7, %c0_50, %c0_51] : memref<9x8x4xf32, #tpu.memory_space<vmem>>, vector<1x8x4xf32>
    %50 = vector.shape_cast %49 : vector<1x8x4xf32> to vector<8x4xf32>
    %cst_52 = arith.constant dense<0.000000e+00> : vector<8x128xf32>
    %51 = tpu.matmul %50, %0, %cst_52 {dimension_numbers = #tpu.dot_dimension_numbers<[1], [0], [0], [1], [0, 0, 1, 1], [], []>} : vector<8x4xf32>, vector<4x128xf32>, vector<8x128xf32> -> vector<8x128xf32>
    %c7_53 = arith.constant 7 : index
    %c0_54 = arith.constant 0 : index
    %c0_55 = arith.constant 0 : index
    %52 = vector.load %arg1[%c7_53, %c0_54, %c0_55] : memref<9x128x128xf32, #tpu.memory_space<vmem>>, vector<1x128x128xf32>
    %53 = vector.shape_cast %52 : vector<1x128x128xf32> to vector<128x128xf32>
    %cst_56 = arith.constant dense<0.000000e+00> : vector<8x128xf32>
    %54 = tpu.matmul %51, %53, %cst_56 {dimension_numbers = #tpu.dot_dimension_numbers<[1], [0], [0], [1], [0, 0, 1, 1], [], []>} : vector<8x128xf32>, vector<128x128xf32>, vector<8x128xf32> -> vector<8x128xf32>
    %55 = arith.addf %48, %54 : vector<8x128xf32>
    %c8 = arith.constant 8 : index
    %c0_57 = arith.constant 0 : index
    %c0_58 = arith.constant 0 : index
    %56 = vector.load %arg2[%c8, %c0_57, %c0_58] : memref<9x8x4xf32, #tpu.memory_space<vmem>>, vector<1x8x4xf32>
    %57 = vector.shape_cast %56 : vector<1x8x4xf32> to vector<8x4xf32>
    %cst_59 = arith.constant dense<0.000000e+00> : vector<8x128xf32>
    %58 = tpu.matmul %57, %0, %cst_59 {dimension_numbers = #tpu.dot_dimension_numbers<[1], [0], [0], [1], [0, 0, 1, 1], [], []>} : vector<8x4xf32>, vector<4x128xf32>, vector<8x128xf32> -> vector<8x128xf32>
    %c8_60 = arith.constant 8 : index
    %c0_61 = arith.constant 0 : index
    %c0_62 = arith.constant 0 : index
    %59 = vector.load %arg1[%c8_60, %c0_61, %c0_62] : memref<9x128x128xf32, #tpu.memory_space<vmem>>, vector<1x128x128xf32>
    %60 = vector.shape_cast %59 : vector<1x128x128xf32> to vector<128x128xf32>
    %cst_63 = arith.constant dense<0.000000e+00> : vector<8x128xf32>
    %61 = tpu.matmul %58, %60, %cst_63 {dimension_numbers = #tpu.dot_dimension_numbers<[1], [0], [0], [1], [0, 0, 1, 1], [], []>} : vector<8x128xf32>, vector<128x128xf32>, vector<8x128xf32> -> vector<8x128xf32>
    %62 = arith.addf %55, %61 : vector<8x128xf32>
    %c0_64 = arith.constant 0 : index
    %c0_65 = arith.constant 0 : index
    %63 = vector.load %arg3[%c0_64, %c0_65] : memref<8x1xf32, #tpu.memory_space<vmem>>, vector<8x1xf32>
    %64 = vector.broadcast %63 : vector<8x1xf32> to vector<8x128xf32>
    %65 = arith.addf %62, %64 : vector<8x128xf32>
    %cst_66 = arith.constant 0.000000e+00 : f32
    %66 = vector.broadcast %cst_66 : f32 to vector<8x128xf32>
    %67 = arith.cmpf oge, %65, %66 : vector<8x128xf32>
    %cst_67 = arith.constant 0.00999999977 : f32
    %68 = vector.broadcast %cst_67 : f32 to vector<8x128xf32>
    %69 = arith.mulf %68, %65 : vector<8x128xf32>
    %70 = arith.select %67, %65, %69 : vector<8x128xi1>, vector<8x128xf32>
    %c0_68 = arith.constant 0 : index
    %c0_69 = arith.constant 0 : index
    %71 = vector.load %arg4[%c0_68, %c0_69] : memref<8x4xf32, #tpu.memory_space<vmem>>, vector<8x4xf32>
    %cst_70 = arith.constant dense<0.000000e+00> : vector<8x128xf32>
    %72 = tpu.matmul %71, %0, %cst_70 {dimension_numbers = #tpu.dot_dimension_numbers<[1], [0], [0], [1], [0, 0, 1, 1], [], []>} : vector<8x4xf32>, vector<4x128xf32>, vector<8x128xf32> -> vector<8x128xf32>
    %c0_71 = arith.constant 0 : index
    %c0_72 = arith.constant 0 : index
    %73 = vector.load %arg5[%c0_71, %c0_72] : memref<8x8xf32, #tpu.memory_space<vmem>>, vector<8x8xf32>
    %cst_73 = arith.constant dense<0.000000e+00> : vector<8x128xf32>
    %74 = tpu.matmul %73, %70, %cst_73 {dimension_numbers = #tpu.dot_dimension_numbers<[1], [0], [0], [1], [0, 0, 1, 1], [], []>} : vector<8x8xf32>, vector<8x128xf32>, vector<8x128xf32> -> vector<8x128xf32>
    %75 = arith.addf %72, %74 : vector<8x128xf32>
    %c0_74 = arith.constant 0 : index
    %c0_75 = arith.constant 0 : index
    %76 = vector.load %arg6[%c0_74, %c0_75] : memref<8x1xf32, #tpu.memory_space<vmem>>, vector<8x1xf32>
    %77 = vector.broadcast %76 : vector<8x1xf32> to vector<8x128xf32>
    %78 = arith.addf %75, %77 : vector<8x128xf32>
    %c0_76 = arith.constant 0 : index
    %c0_77 = arith.constant 0 : index
    %c0_78 = arith.constant 0 : index
    %79 = vector.load %arg7[%c0_76, %c0_77, %c0_78] : memref<9x8x8xf32, #tpu.memory_space<vmem>>, vector<1x8x8xf32>
    %80 = vector.shape_cast %79 : vector<1x8x8xf32> to vector<8x8xf32>
    %cst_79 = arith.constant dense<0.000000e+00> : vector<8x128xf32>
    %81 = tpu.matmul %80, %78, %cst_79 {dimension_numbers = #tpu.dot_dimension_numbers<[1], [0], [0], [1], [0, 0, 1, 1], [], []>} : vector<8x8xf32>, vector<8x128xf32>, vector<8x128xf32> -> vector<8x128xf32>
    %c0_80 = arith.constant 0 : index
    %c0_81 = arith.constant 0 : index
    %c0_82 = arith.constant 0 : index
    %82 = vector.load %arg1[%c0_80, %c0_81, %c0_82] : memref<9x128x128xf32, #tpu.memory_space<vmem>>, vector<1x128x128xf32>
    %83 = vector.shape_cast %82 : vector<1x128x128xf32> to vector<128x128xf32>
    %cst_83 = arith.constant dense<0.000000e+00> : vector<8x128xf32>
    %84 = tpu.matmul %81, %83, %cst_83 {dimension_numbers = #tpu.dot_dimension_numbers<[1], [0], [0], [1], [0, 0, 1, 1], [], []>} : vector<8x128xf32>, vector<128x128xf32>, vector<8x128xf32> -> vector<8x128xf32>
    %c1_84 = arith.constant 1 : index
    %c0_85 = arith.constant 0 : index
    %c0_86 = arith.constant 0 : index
    %85 = vector.load %arg7[%c1_84, %c0_85, %c0_86] : memref<9x8x8xf32, #tpu.memory_space<vmem>>, vector<1x8x8xf32>
    %86 = vector.shape_cast %85 : vector<1x8x8xf32> to vector<8x8xf32>
    %cst_87 = arith.constant dense<0.000000e+00> : vector<8x128xf32>
    %87 = tpu.matmul %86, %78, %cst_87 {dimension_numbers = #tpu.dot_dimension_numbers<[1], [0], [0], [1], [0, 0, 1, 1], [], []>} : vector<8x8xf32>, vector<8x128xf32>, vector<8x128xf32> -> vector<8x128xf32>
    %c1_88 = arith.constant 1 : index
    %c0_89 = arith.constant 0 : index
    %c0_90 = arith.constant 0 : index
    %88 = vector.load %arg1[%c1_88, %c0_89, %c0_90] : memref<9x128x128xf32, #tpu.memory_space<vmem>>, vector<1x128x128xf32>
    %89 = vector.shape_cast %88 : vector<1x128x128xf32> to vector<128x128xf32>
    %cst_91 = arith.constant dense<0.000000e+00> : vector<8x128xf32>
    %90 = tpu.matmul %87, %89, %cst_91 {dimension_numbers = #tpu.dot_dimension_numbers<[1], [0], [0], [1], [0, 0, 1, 1], [], []>} : vector<8x128xf32>, vector<128x128xf32>, vector<8x128xf32> -> vector<8x128xf32>
    %91 = arith.addf %84, %90 : vector<8x128xf32>
    %c2_92 = arith.constant 2 : index
    %c0_93 = arith.constant 0 : index
    %c0_94 = arith.constant 0 : index
    %92 = vector.load %arg7[%c2_92, %c0_93, %c0_94] : memref<9x8x8xf32, #tpu.memory_space<vmem>>, vector<1x8x8xf32>
    %93 = vector.shape_cast %92 : vector<1x8x8xf32> to vector<8x8xf32>
    %cst_95 = arith.constant dense<0.000000e+00> : vector<8x128xf32>
    %94 = tpu.matmul %93, %78, %cst_95 {dimension_numbers = #tpu.dot_dimension_numbers<[1], [0], [0], [1], [0, 0, 1, 1], [], []>} : vector<8x8xf32>, vector<8x128xf32>, vector<8x128xf32> -> vector<8x128xf32>
    %c2_96 = arith.constant 2 : index
    %c0_97 = arith.constant 0 : index
    %c0_98 = arith.constant 0 : index
    %95 = vector.load %arg1[%c2_96, %c0_97, %c0_98] : memref<9x128x128xf32, #tpu.memory_space<vmem>>, vector<1x128x128xf32>
    %96 = vector.shape_cast %95 : vector<1x128x128xf32> to vector<128x128xf32>
    %cst_99 = arith.constant dense<0.000000e+00> : vector<8x128xf32>
    %97 = tpu.matmul %94, %96, %cst_99 {dimension_numbers = #tpu.dot_dimension_numbers<[1], [0], [0], [1], [0, 0, 1, 1], [], []>} : vector<8x128xf32>, vector<128x128xf32>, vector<8x128xf32> -> vector<8x128xf32>
    %98 = arith.addf %91, %97 : vector<8x128xf32>
    %c3_100 = arith.constant 3 : index
    %c0_101 = arith.constant 0 : index
    %c0_102 = arith.constant 0 : index
    %99 = vector.load %arg7[%c3_100, %c0_101, %c0_102] : memref<9x8x8xf32, #tpu.memory_space<vmem>>, vector<1x8x8xf32>
    %100 = vector.shape_cast %99 : vector<1x8x8xf32> to vector<8x8xf32>
    %cst_103 = arith.constant dense<0.000000e+00> : vector<8x128xf32>
    %101 = tpu.matmul %100, %78, %cst_103 {dimension_numbers = #tpu.dot_dimension_numbers<[1], [0], [0], [1], [0, 0, 1, 1], [], []>} : vector<8x8xf32>, vector<8x128xf32>, vector<8x128xf32> -> vector<8x128xf32>
    %c3_104 = arith.constant 3 : index
    %c0_105 = arith.constant 0 : index
    %c0_106 = arith.constant 0 : index
    %102 = vector.load %arg1[%c3_104, %c0_105, %c0_106] : memref<9x128x128xf32, #tpu.memory_space<vmem>>, vector<1x128x128xf32>
    %103 = vector.shape_cast %102 : vector<1x128x128xf32> to vector<128x128xf32>
    %cst_107 = arith.constant dense<0.000000e+00> : vector<8x128xf32>
    %104 = tpu.matmul %101, %103, %cst_107 {dimension_numbers = #tpu.dot_dimension_numbers<[1], [0], [0], [1], [0, 0, 1, 1], [], []>} : vector<8x128xf32>, vector<128x128xf32>, vector<8x128xf32> -> vector<8x128xf32>
    %105 = arith.addf %98, %104 : vector<8x128xf32>
    %c4_108 = arith.constant 4 : index
    %c0_109 = arith.constant 0 : index
    %c0_110 = arith.constant 0 : index
    %106 = vector.load %arg7[%c4_108, %c0_109, %c0_110] : memref<9x8x8xf32, #tpu.memory_space<vmem>>, vector<1x8x8xf32>
    %107 = vector.shape_cast %106 : vector<1x8x8xf32> to vector<8x8xf32>
    %cst_111 = arith.constant dense<0.000000e+00> : vector<8x128xf32>
    %108 = tpu.matmul %107, %78, %cst_111 {dimension_numbers = #tpu.dot_dimension_numbers<[1], [0], [0], [1], [0, 0, 1, 1], [], []>} : vector<8x8xf32>, vector<8x128xf32>, vector<8x128xf32> -> vector<8x128xf32>
    %c4_112 = arith.constant 4 : index
    %c0_113 = arith.constant 0 : index
    %c0_114 = arith.constant 0 : index
    %109 = vector.load %arg1[%c4_112, %c0_113, %c0_114] : memref<9x128x128xf32, #tpu.memory_space<vmem>>, vector<1x128x128xf32>
    %110 = vector.shape_cast %109 : vector<1x128x128xf32> to vector<128x128xf32>
    %cst_115 = arith.constant dense<0.000000e+00> : vector<8x128xf32>
    %111 = tpu.matmul %108, %110, %cst_115 {dimension_numbers = #tpu.dot_dimension_numbers<[1], [0], [0], [1], [0, 0, 1, 1], [], []>} : vector<8x128xf32>, vector<128x128xf32>, vector<8x128xf32> -> vector<8x128xf32>
    %112 = arith.addf %105, %111 : vector<8x128xf32>
    %c5_116 = arith.constant 5 : index
    %c0_117 = arith.constant 0 : index
    %c0_118 = arith.constant 0 : index
    %113 = vector.load %arg7[%c5_116, %c0_117, %c0_118] : memref<9x8x8xf32, #tpu.memory_space<vmem>>, vector<1x8x8xf32>
    %114 = vector.shape_cast %113 : vector<1x8x8xf32> to vector<8x8xf32>
    %cst_119 = arith.constant dense<0.000000e+00> : vector<8x128xf32>
    %115 = tpu.matmul %114, %78, %cst_119 {dimension_numbers = #tpu.dot_dimension_numbers<[1], [0], [0], [1], [0, 0, 1, 1], [], []>} : vector<8x8xf32>, vector<8x128xf32>, vector<8x128xf32> -> vector<8x128xf32>
    %c5_120 = arith.constant 5 : index
    %c0_121 = arith.constant 0 : index
    %c0_122 = arith.constant 0 : index
    %116 = vector.load %arg1[%c5_120, %c0_121, %c0_122] : memref<9x128x128xf32, #tpu.memory_space<vmem>>, vector<1x128x128xf32>
    %117 = vector.shape_cast %116 : vector<1x128x128xf32> to vector<128x128xf32>
    %cst_123 = arith.constant dense<0.000000e+00> : vector<8x128xf32>
    %118 = tpu.matmul %115, %117, %cst_123 {dimension_numbers = #tpu.dot_dimension_numbers<[1], [0], [0], [1], [0, 0, 1, 1], [], []>} : vector<8x128xf32>, vector<128x128xf32>, vector<8x128xf32> -> vector<8x128xf32>
    %119 = arith.addf %112, %118 : vector<8x128xf32>
    %c6_124 = arith.constant 6 : index
    %c0_125 = arith.constant 0 : index
    %c0_126 = arith.constant 0 : index
    %120 = vector.load %arg7[%c6_124, %c0_125, %c0_126] : memref<9x8x8xf32, #tpu.memory_space<vmem>>, vector<1x8x8xf32>
    %121 = vector.shape_cast %120 : vector<1x8x8xf32> to vector<8x8xf32>
    %cst_127 = arith.constant dense<0.000000e+00> : vector<8x128xf32>
    %122 = tpu.matmul %121, %78, %cst_127 {dimension_numbers = #tpu.dot_dimension_numbers<[1], [0], [0], [1], [0, 0, 1, 1], [], []>} : vector<8x8xf32>, vector<8x128xf32>, vector<8x128xf32> -> vector<8x128xf32>
    %c6_128 = arith.constant 6 : index
    %c0_129 = arith.constant 0 : index
    %c0_130 = arith.constant 0 : index
    %123 = vector.load %arg1[%c6_128, %c0_129, %c0_130] : memref<9x128x128xf32, #tpu.memory_space<vmem>>, vector<1x128x128xf32>
    %124 = vector.shape_cast %123 : vector<1x128x128xf32> to vector<128x128xf32>
    %cst_131 = arith.constant dense<0.000000e+00> : vector<8x128xf32>
    %125 = tpu.matmul %122, %124, %cst_131 {dimension_numbers = #tpu.dot_dimension_numbers<[1], [0], [0], [1], [0, 0, 1, 1], [], []>} : vector<8x128xf32>, vector<128x128xf32>, vector<8x128xf32> -> vector<8x128xf32>
    %126 = arith.addf %119, %125 : vector<8x128xf32>
    %c7_132 = arith.constant 7 : index
    %c0_133 = arith.constant 0 : index
    %c0_134 = arith.constant 0 : index
    %127 = vector.load %arg7[%c7_132, %c0_133, %c0_134] : memref<9x8x8xf32, #tpu.memory_space<vmem>>, vector<1x8x8xf32>
    %128 = vector.shape_cast %127 : vector<1x8x8xf32> to vector<8x8xf32>
    %cst_135 = arith.constant dense<0.000000e+00> : vector<8x128xf32>
    %129 = tpu.matmul %128, %78, %cst_135 {dimension_numbers = #tpu.dot_dimension_numbers<[1], [0], [0], [1], [0, 0, 1, 1], [], []>} : vector<8x8xf32>, vector<8x128xf32>, vector<8x128xf32> -> vector<8x128xf32>
    %c7_136 = arith.constant 7 : index
    %c0_137 = arith.constant 0 : index
    %c0_138 = arith.constant 0 : index
    %130 = vector.load %arg1[%c7_136, %c0_137, %c0_138] : memref<9x128x128xf32, #tpu.memory_space<vmem>>, vector<1x128x128xf32>
    %131 = vector.shape_cast %130 : vector<1x128x128xf32> to vector<128x128xf32>
    %cst_139 = arith.constant dense<0.000000e+00> : vector<8x128xf32>
    %132 = tpu.matmul %129, %131, %cst_139 {dimension_numbers = #tpu.dot_dimension_numbers<[1], [0], [0], [1], [0, 0, 1, 1], [], []>} : vector<8x128xf32>, vector<128x128xf32>, vector<8x128xf32> -> vector<8x128xf32>
    %133 = arith.addf %126, %132 : vector<8x128xf32>
    %c8_140 = arith.constant 8 : index
    %c0_141 = arith.constant 0 : index
    %c0_142 = arith.constant 0 : index
    %134 = vector.load %arg7[%c8_140, %c0_141, %c0_142] : memref<9x8x8xf32, #tpu.memory_space<vmem>>, vector<1x8x8xf32>
    %135 = vector.shape_cast %134 : vector<1x8x8xf32> to vector<8x8xf32>
    %cst_143 = arith.constant dense<0.000000e+00> : vector<8x128xf32>
    %136 = tpu.matmul %135, %78, %cst_143 {dimension_numbers = #tpu.dot_dimension_numbers<[1], [0], [0], [1], [0, 0, 1, 1], [], []>} : vector<8x8xf32>, vector<8x128xf32>, vector<8x128xf32> -> vector<8x128xf32>
    %c8_144 = arith.constant 8 : index
    %c0_145 = arith.constant 0 : index
    %c0_146 = arith.constant 0 : index
    %137 = vector.load %arg1[%c8_144, %c0_145, %c0_146] : memref<9x128x128xf32, #tpu.memory_space<vmem>>, vector<1x128x128xf32>
    %138 = vector.shape_cast %137 : vector<1x128x128xf32> to vector<128x128xf32>
    %cst_147 = arith.constant dense<0.000000e+00> : vector<8x128xf32>
    %139 = tpu.matmul %136, %138, %cst_147 {dimension_numbers = #tpu.dot_dimension_numbers<[1], [0], [0], [1], [0, 0, 1, 1], [], []>} : vector<8x128xf32>, vector<128x128xf32>, vector<8x128xf32> -> vector<8x128xf32>
    %140 = arith.addf %133, %139 : vector<8x128xf32>
    %c0_148 = arith.constant 0 : index
    %c0_149 = arith.constant 0 : index
    %141 = vector.load %arg8[%c0_148, %c0_149] : memref<8x1xf32, #tpu.memory_space<vmem>>, vector<8x1xf32>
    %142 = vector.broadcast %141 : vector<8x1xf32> to vector<8x128xf32>
    %143 = arith.addf %140, %142 : vector<8x128xf32>
    %cst_150 = arith.constant 0.000000e+00 : f32
    %144 = vector.broadcast %cst_150 : f32 to vector<8x128xf32>
    %145 = arith.cmpf oge, %143, %144 : vector<8x128xf32>
    %cst_151 = arith.constant 0.00999999977 : f32
    %146 = vector.broadcast %cst_151 : f32 to vector<8x128xf32>
    %147 = arith.mulf %146, %143 : vector<8x128xf32>
    %148 = arith.select %145, %143, %147 : vector<8x128xi1>, vector<8x128xf32>
    %c0_152 = arith.constant 0 : index
    %c0_153 = arith.constant 0 : index
    %149 = vector.load %arg9[%c0_152, %c0_153] : memref<8x4xf32, #tpu.memory_space<vmem>>, vector<8x4xf32>
    %cst_154 = arith.constant dense<0.000000e+00> : vector<8x128xf32>
    %150 = tpu.matmul %149, %0, %cst_154 {dimension_numbers = #tpu.dot_dimension_numbers<[1], [0], [0], [1], [0, 0, 1, 1], [], []>} : vector<8x4xf32>, vector<4x128xf32>, vector<8x128xf32> -> vector<8x128xf32>
    %c0_155 = arith.constant 0 : index
    %c0_156 = arith.constant 0 : index
    %151 = vector.load %arg10[%c0_155, %c0_156] : memref<8x8xf32, #tpu.memory_space<vmem>>, vector<8x8xf32>
    %cst_157 = arith.constant dense<0.000000e+00> : vector<8x128xf32>
    %152 = tpu.matmul %151, %70, %cst_157 {dimension_numbers = #tpu.dot_dimension_numbers<[1], [0], [0], [1], [0, 0, 1, 1], [], []>} : vector<8x8xf32>, vector<8x128xf32>, vector<8x128xf32> -> vector<8x128xf32>
    %153 = arith.addf %150, %152 : vector<8x128xf32>
    %c0_158 = arith.constant 0 : index
    %c0_159 = arith.constant 0 : index
    %154 = vector.load %arg11[%c0_158, %c0_159] : memref<8x8xf32, #tpu.memory_space<vmem>>, vector<8x8xf32>
    %cst_160 = arith.constant dense<0.000000e+00> : vector<8x128xf32>
    %155 = tpu.matmul %154, %148, %cst_160 {dimension_numbers = #tpu.dot_dimension_numbers<[1], [0], [0], [1], [0, 0, 1, 1], [], []>} : vector<8x8xf32>, vector<8x128xf32>, vector<8x128xf32> -> vector<8x128xf32>
    %156 = arith.addf %153, %155 : vector<8x128xf32>
    %c0_161 = arith.constant 0 : index
    %c0_162 = arith.constant 0 : index
    %157 = vector.load %arg12[%c0_161, %c0_162] : memref<8x1xf32, #tpu.memory_space<vmem>>, vector<8x1xf32>
    %158 = vector.broadcast %157 : vector<8x1xf32> to vector<8x128xf32>
    %159 = arith.addf %156, %158 : vector<8x128xf32>
    %c0_163 = arith.constant 0 : index
    %c0_164 = arith.constant 0 : index
    %c0_165 = arith.constant 0 : index
    %160 = vector.load %arg13[%c0_163, %c0_164, %c0_165] : memref<9x8x8xf32, #tpu.memory_space<vmem>>, vector<1x8x8xf32>
    %161 = vector.shape_cast %160 : vector<1x8x8xf32> to vector<8x8xf32>
    %cst_166 = arith.constant dense<0.000000e+00> : vector<8x128xf32>
    %162 = tpu.matmul %161, %159, %cst_166 {dimension_numbers = #tpu.dot_dimension_numbers<[1], [0], [0], [1], [0, 0, 1, 1], [], []>} : vector<8x8xf32>, vector<8x128xf32>, vector<8x128xf32> -> vector<8x128xf32>
    %c0_167 = arith.constant 0 : index
    %c0_168 = arith.constant 0 : index
    %c0_169 = arith.constant 0 : index
    %163 = vector.load %arg1[%c0_167, %c0_168, %c0_169] : memref<9x128x128xf32, #tpu.memory_space<vmem>>, vector<1x128x128xf32>
    %164 = vector.shape_cast %163 : vector<1x128x128xf32> to vector<128x128xf32>
    %cst_170 = arith.constant dense<0.000000e+00> : vector<8x128xf32>
    %165 = tpu.matmul %162, %164, %cst_170 {dimension_numbers = #tpu.dot_dimension_numbers<[1], [0], [0], [1], [0, 0, 1, 1], [], []>} : vector<8x128xf32>, vector<128x128xf32>, vector<8x128xf32> -> vector<8x128xf32>
    %c1_171 = arith.constant 1 : index
    %c0_172 = arith.constant 0 : index
    %c0_173 = arith.constant 0 : index
    %166 = vector.load %arg13[%c1_171, %c0_172, %c0_173] : memref<9x8x8xf32, #tpu.memory_space<vmem>>, vector<1x8x8xf32>
    %167 = vector.shape_cast %166 : vector<1x8x8xf32> to vector<8x8xf32>
    %cst_174 = arith.constant dense<0.000000e+00> : vector<8x128xf32>
    %168 = tpu.matmul %167, %159, %cst_174 {dimension_numbers = #tpu.dot_dimension_numbers<[1], [0], [0], [1], [0, 0, 1, 1], [], []>} : vector<8x8xf32>, vector<8x128xf32>, vector<8x128xf32> -> vector<8x128xf32>
    %c1_175 = arith.constant 1 : index
    %c0_176 = arith.constant 0 : index
    %c0_177 = arith.constant 0 : index
    %169 = vector.load %arg1[%c1_175, %c0_176, %c0_177] : memref<9x128x128xf32, #tpu.memory_space<vmem>>, vector<1x128x128xf32>
    %170 = vector.shape_cast %169 : vector<1x128x128xf32> to vector<128x128xf32>
    %cst_178 = arith.constant dense<0.000000e+00> : vector<8x128xf32>
    %171 = tpu.matmul %168, %170, %cst_178 {dimension_numbers = #tpu.dot_dimension_numbers<[1], [0], [0], [1], [0, 0, 1, 1], [], []>} : vector<8x128xf32>, vector<128x128xf32>, vector<8x128xf32> -> vector<8x128xf32>
    %172 = arith.addf %165, %171 : vector<8x128xf32>
    %c2_179 = arith.constant 2 : index
    %c0_180 = arith.constant 0 : index
    %c0_181 = arith.constant 0 : index
    %173 = vector.load %arg13[%c2_179, %c0_180, %c0_181] : memref<9x8x8xf32, #tpu.memory_space<vmem>>, vector<1x8x8xf32>
    %174 = vector.shape_cast %173 : vector<1x8x8xf32> to vector<8x8xf32>
    %cst_182 = arith.constant dense<0.000000e+00> : vector<8x128xf32>
    %175 = tpu.matmul %174, %159, %cst_182 {dimension_numbers = #tpu.dot_dimension_numbers<[1], [0], [0], [1], [0, 0, 1, 1], [], []>} : vector<8x8xf32>, vector<8x128xf32>, vector<8x128xf32> -> vector<8x128xf32>
    %c2_183 = arith.constant 2 : index
    %c0_184 = arith.constant 0 : index
    %c0_185 = arith.constant 0 : index
    %176 = vector.load %arg1[%c2_183, %c0_184, %c0_185] : memref<9x128x128xf32, #tpu.memory_space<vmem>>, vector<1x128x128xf32>
    %177 = vector.shape_cast %176 : vector<1x128x128xf32> to vector<128x128xf32>
    %cst_186 = arith.constant dense<0.000000e+00> : vector<8x128xf32>
    %178 = tpu.matmul %175, %177, %cst_186 {dimension_numbers = #tpu.dot_dimension_numbers<[1], [0], [0], [1], [0, 0, 1, 1], [], []>} : vector<8x128xf32>, vector<128x128xf32>, vector<8x128xf32> -> vector<8x128xf32>
    %179 = arith.addf %172, %178 : vector<8x128xf32>
    %c3_187 = arith.constant 3 : index
    %c0_188 = arith.constant 0 : index
    %c0_189 = arith.constant 0 : index
    %180 = vector.load %arg13[%c3_187, %c0_188, %c0_189] : memref<9x8x8xf32, #tpu.memory_space<vmem>>, vector<1x8x8xf32>
    %181 = vector.shape_cast %180 : vector<1x8x8xf32> to vector<8x8xf32>
    %cst_190 = arith.constant dense<0.000000e+00> : vector<8x128xf32>
    %182 = tpu.matmul %181, %159, %cst_190 {dimension_numbers = #tpu.dot_dimension_numbers<[1], [0], [0], [1], [0, 0, 1, 1], [], []>} : vector<8x8xf32>, vector<8x128xf32>, vector<8x128xf32> -> vector<8x128xf32>
    %c3_191 = arith.constant 3 : index
    %c0_192 = arith.constant 0 : index
    %c0_193 = arith.constant 0 : index
    %183 = vector.load %arg1[%c3_191, %c0_192, %c0_193] : memref<9x128x128xf32, #tpu.memory_space<vmem>>, vector<1x128x128xf32>
    %184 = vector.shape_cast %183 : vector<1x128x128xf32> to vector<128x128xf32>
    %cst_194 = arith.constant dense<0.000000e+00> : vector<8x128xf32>
    %185 = tpu.matmul %182, %184, %cst_194 {dimension_numbers = #tpu.dot_dimension_numbers<[1], [0], [0], [1], [0, 0, 1, 1], [], []>} : vector<8x128xf32>, vector<128x128xf32>, vector<8x128xf32> -> vector<8x128xf32>
    %186 = arith.addf %179, %185 : vector<8x128xf32>
    %c4_195 = arith.constant 4 : index
    %c0_196 = arith.constant 0 : index
    %c0_197 = arith.constant 0 : index
    %187 = vector.load %arg13[%c4_195, %c0_196, %c0_197] : memref<9x8x8xf32, #tpu.memory_space<vmem>>, vector<1x8x8xf32>
    %188 = vector.shape_cast %187 : vector<1x8x8xf32> to vector<8x8xf32>
    %cst_198 = arith.constant dense<0.000000e+00> : vector<8x128xf32>
    %189 = tpu.matmul %188, %159, %cst_198 {dimension_numbers = #tpu.dot_dimension_numbers<[1], [0], [0], [1], [0, 0, 1, 1], [], []>} : vector<8x8xf32>, vector<8x128xf32>, vector<8x128xf32> -> vector<8x128xf32>
    %c4_199 = arith.constant 4 : index
    %c0_200 = arith.constant 0 : index
    %c0_201 = arith.constant 0 : index
    %190 = vector.load %arg1[%c4_199, %c0_200, %c0_201] : memref<9x128x128xf32, #tpu.memory_space<vmem>>, vector<1x128x128xf32>
    %191 = vector.shape_cast %190 : vector<1x128x128xf32> to vector<128x128xf32>
    %cst_202 = arith.constant dense<0.000000e+00> : vector<8x128xf32>
    %192 = tpu.matmul %189, %191, %cst_202 {dimension_numbers = #tpu.dot_dimension_numbers<[1], [0], [0], [1], [0, 0, 1, 1], [], []>} : vector<8x128xf32>, vector<128x128xf32>, vector<8x128xf32> -> vector<8x128xf32>
    %193 = arith.addf %186, %192 : vector<8x128xf32>
    %c5_203 = arith.constant 5 : index
    %c0_204 = arith.constant 0 : index
    %c0_205 = arith.constant 0 : index
    %194 = vector.load %arg13[%c5_203, %c0_204, %c0_205] : memref<9x8x8xf32, #tpu.memory_space<vmem>>, vector<1x8x8xf32>
    %195 = vector.shape_cast %194 : vector<1x8x8xf32> to vector<8x8xf32>
    %cst_206 = arith.constant dense<0.000000e+00> : vector<8x128xf32>
    %196 = tpu.matmul %195, %159, %cst_206 {dimension_numbers = #tpu.dot_dimension_numbers<[1], [0], [0], [1], [0, 0, 1, 1], [], []>} : vector<8x8xf32>, vector<8x128xf32>, vector<8x128xf32> -> vector<8x128xf32>
    %c5_207 = arith.constant 5 : index
    %c0_208 = arith.constant 0 : index
    %c0_209 = arith.constant 0 : index
    %197 = vector.load %arg1[%c5_207, %c0_208, %c0_209] : memref<9x128x128xf32, #tpu.memory_space<vmem>>, vector<1x128x128xf32>
    %198 = vector.shape_cast %197 : vector<1x128x128xf32> to vector<128x128xf32>
    %cst_210 = arith.constant dense<0.000000e+00> : vector<8x128xf32>
    %199 = tpu.matmul %196, %198, %cst_210 {dimension_numbers = #tpu.dot_dimension_numbers<[1], [0], [0], [1], [0, 0, 1, 1], [], []>} : vector<8x128xf32>, vector<128x128xf32>, vector<8x128xf32> -> vector<8x128xf32>
    %200 = arith.addf %193, %199 : vector<8x128xf32>
    %c6_211 = arith.constant 6 : index
    %c0_212 = arith.constant 0 : index
    %c0_213 = arith.constant 0 : index
    %201 = vector.load %arg13[%c6_211, %c0_212, %c0_213] : memref<9x8x8xf32, #tpu.memory_space<vmem>>, vector<1x8x8xf32>
    %202 = vector.shape_cast %201 : vector<1x8x8xf32> to vector<8x8xf32>
    %cst_214 = arith.constant dense<0.000000e+00> : vector<8x128xf32>
    %203 = tpu.matmul %202, %159, %cst_214 {dimension_numbers = #tpu.dot_dimension_numbers<[1], [0], [0], [1], [0, 0, 1, 1], [], []>} : vector<8x8xf32>, vector<8x128xf32>, vector<8x128xf32> -> vector<8x128xf32>
    %c6_215 = arith.constant 6 : index
    %c0_216 = arith.constant 0 : index
    %c0_217 = arith.constant 0 : index
    %204 = vector.load %arg1[%c6_215, %c0_216, %c0_217] : memref<9x128x128xf32, #tpu.memory_space<vmem>>, vector<1x128x128xf32>
    %205 = vector.shape_cast %204 : vector<1x128x128xf32> to vector<128x128xf32>
    %cst_218 = arith.constant dense<0.000000e+00> : vector<8x128xf32>
    %206 = tpu.matmul %203, %205, %cst_218 {dimension_numbers = #tpu.dot_dimension_numbers<[1], [0], [0], [1], [0, 0, 1, 1], [], []>} : vector<8x128xf32>, vector<128x128xf32>, vector<8x128xf32> -> vector<8x128xf32>
    %207 = arith.addf %200, %206 : vector<8x128xf32>
    %c7_219 = arith.constant 7 : index
    %c0_220 = arith.constant 0 : index
    %c0_221 = arith.constant 0 : index
    %208 = vector.load %arg13[%c7_219, %c0_220, %c0_221] : memref<9x8x8xf32, #tpu.memory_space<vmem>>, vector<1x8x8xf32>
    %209 = vector.shape_cast %208 : vector<1x8x8xf32> to vector<8x8xf32>
    %cst_222 = arith.constant dense<0.000000e+00> : vector<8x128xf32>
    %210 = tpu.matmul %209, %159, %cst_222 {dimension_numbers = #tpu.dot_dimension_numbers<[1], [0], [0], [1], [0, 0, 1, 1], [], []>} : vector<8x8xf32>, vector<8x128xf32>, vector<8x128xf32> -> vector<8x128xf32>
    %c7_223 = arith.constant 7 : index
    %c0_224 = arith.constant 0 : index
    %c0_225 = arith.constant 0 : index
    %211 = vector.load %arg1[%c7_223, %c0_224, %c0_225] : memref<9x128x128xf32, #tpu.memory_space<vmem>>, vector<1x128x128xf32>
    %212 = vector.shape_cast %211 : vector<1x128x128xf32> to vector<128x128xf32>
    %cst_226 = arith.constant dense<0.000000e+00> : vector<8x128xf32>
    %213 = tpu.matmul %210, %212, %cst_226 {dimension_numbers = #tpu.dot_dimension_numbers<[1], [0], [0], [1], [0, 0, 1, 1], [], []>} : vector<8x128xf32>, vector<128x128xf32>, vector<8x128xf32> -> vector<8x128xf32>
    %214 = arith.addf %207, %213 : vector<8x128xf32>
    %c8_227 = arith.constant 8 : index
    %c0_228 = arith.constant 0 : index
    %c0_229 = arith.constant 0 : index
    %215 = vector.load %arg13[%c8_227, %c0_228, %c0_229] : memref<9x8x8xf32, #tpu.memory_space<vmem>>, vector<1x8x8xf32>
    %216 = vector.shape_cast %215 : vector<1x8x8xf32> to vector<8x8xf32>
    %cst_230 = arith.constant dense<0.000000e+00> : vector<8x128xf32>
    %217 = tpu.matmul %216, %159, %cst_230 {dimension_numbers = #tpu.dot_dimension_numbers<[1], [0], [0], [1], [0, 0, 1, 1], [], []>} : vector<8x8xf32>, vector<8x128xf32>, vector<8x128xf32> -> vector<8x128xf32>
    %c8_231 = arith.constant 8 : index
    %c0_232 = arith.constant 0 : index
    %c0_233 = arith.constant 0 : index
    %218 = vector.load %arg1[%c8_231, %c0_232, %c0_233] : memref<9x128x128xf32, #tpu.memory_space<vmem>>, vector<1x128x128xf32>
    %219 = vector.shape_cast %218 : vector<1x128x128xf32> to vector<128x128xf32>
    %cst_234 = arith.constant dense<0.000000e+00> : vector<8x128xf32>
    %220 = tpu.matmul %217, %219, %cst_234 {dimension_numbers = #tpu.dot_dimension_numbers<[1], [0], [0], [1], [0, 0, 1, 1], [], []>} : vector<8x128xf32>, vector<128x128xf32>, vector<8x128xf32> -> vector<8x128xf32>
    %221 = arith.addf %214, %220 : vector<8x128xf32>
    %c0_235 = arith.constant 0 : index
    %c0_236 = arith.constant 0 : index
    %222 = vector.load %arg14[%c0_235, %c0_236] : memref<8x1xf32, #tpu.memory_space<vmem>>, vector<8x1xf32>
    %223 = vector.broadcast %222 : vector<8x1xf32> to vector<8x128xf32>
    %224 = arith.addf %221, %223 : vector<8x128xf32>
    %cst_237 = arith.constant 0.000000e+00 : f32
    %225 = vector.broadcast %cst_237 : f32 to vector<8x128xf32>
    %226 = arith.cmpf oge, %224, %225 : vector<8x128xf32>
    %cst_238 = arith.constant 0.00999999977 : f32
    %227 = vector.broadcast %cst_238 : f32 to vector<8x128xf32>
    %228 = arith.mulf %227, %224 : vector<8x128xf32>
    %229 = arith.select %226, %224, %228 : vector<8x128xi1>, vector<8x128xf32>
    %cst_239 = arith.constant dense<0.000000e+00> : vector<8xf32>
    %230 = vector.multi_reduction <add>, %229, %cst_239 [1] : vector<8x128xf32> to vector<8xf32>
    %231 = vector.shape_cast %230 : vector<8xf32> to vector<8x1xf32>
    %cst_240 = arith.constant 1.280000e+02 : f32
    %232 = vector.broadcast %cst_240 : f32 to vector<8x1xf32>
    %233 = arith.divf %231, %232 : vector<8x1xf32>
    %234 = vector.broadcast %233 : vector<8x1xf32> to vector<8x128xf32>
    %235 = arith.subf %229, %234 : vector<8x128xf32>
    %236 = arith.mulf %235, %235 : vector<8x128xf32>
    %cst_241 = arith.constant dense<0.000000e+00> : vector<8xf32>
    %237 = vector.multi_reduction <add>, %236, %cst_241 [1] : vector<8x128xf32> to vector<8xf32>
    %238 = vector.shape_cast %237 : vector<8xf32> to vector<8x1xf32>
    %cst_242 = arith.constant 1.280000e+02 : f32
    %239 = vector.broadcast %cst_242 : f32 to vector<8x1xf32>
    %240 = arith.divf %238, %239 : vector<8x1xf32>
    %cst_243 = arith.constant 9.99999974E-6 : f32
    %241 = vector.broadcast %cst_243 : f32 to vector<8x1xf32>
    %242 = arith.addf %240, %241 : vector<8x1xf32>
    %243 = math.rsqrt %242 : vector<8x1xf32>
    %244 = vector.broadcast %243 : vector<8x1xf32> to vector<8x128xf32>
    %245 = arith.mulf %235, %244 : vector<8x128xf32>
    %c0_244 = arith.constant 0 : index
    %c0_245 = arith.constant 0 : index
    %246 = vector.load %arg15[%c0_244, %c0_245] : memref<8x1xf32, #tpu.memory_space<vmem>>, vector<8x1xf32>
    %247 = vector.broadcast %246 : vector<8x1xf32> to vector<8x128xf32>
    %248 = arith.mulf %245, %247 : vector<8x128xf32>
    %c0_246 = arith.constant 0 : index
    %c0_247 = arith.constant 0 : index
    %249 = vector.load %arg16[%c0_246, %c0_247] : memref<8x1xf32, #tpu.memory_space<vmem>>, vector<8x1xf32>
    %250 = vector.broadcast %249 : vector<8x1xf32> to vector<8x128xf32>
    %251 = arith.addf %248, %250 : vector<8x128xf32>
    %c0_248 = arith.constant 0 : index
    %c0_249 = arith.constant 0 : index
    %252 = vector.load %arg17[%c0_248, %c0_249] : memref<8x128xf32, #tpu.memory_space<vmem>>, vector<8x128xf32>
    tpu.vector_store %arg17[%c0_248, %c0_249], %251 {strides = array<i32>} : memref<8x128xf32, #tpu.memory_space<vmem>>, vector<8x128xf32>,
    return
  }
}

</mosaic_0001>

<bundles_post_ra>
// kernel: tpu_custom_call.1
= control target key start
LH: loop header
LB: loop body
LE: loop exit
PB: predicated region body
PF: predicated region fallthrough
CT: control target
= control target key end

     0   :  { %s2854_s0 = inlined_call_operand.vmem [shape: f32[4,128], index: 0, kind: input, shape index: {}]   ;;  %s2855_s1 = inlined_call_operand.hbm [shape: f32[9,128,128], index: 1, kind: input, shape index: {}]   ;;  %s2856_s2 = inlined_call_operand.vmem [shape: f32[9,8,4], index: 2, kind: input, shape index: {}]   ;;  %s2857_s3 = inlined_call_operand.vmem [shape: f32[8,1], index: 3, kind: input, shape index: {}]   ;;  %s2858_s4 = inlined_call_operand.vmem [shape: f32[8,4], index: 4, kind: input, shape index: {}]   ;;  %s2859_s5 = inlined_call_operand.vmem [shape: f32[8,8], index: 5, kind: input, shape index: {}]   ;;  %s2860_s6 = inlined_call_operand.vmem [shape: f32[8,1], index: 6, kind: input, shape index: {}]   ;;  %s2861_s7 = inlined_call_operand.vmem [shape: f32[9,8,8], index: 7, kind: input, shape index: {}]   ;;  %s2862_s8 = inlined_call_operand.vmem [shape: f32[8,1], index: 8, kind: input, shape index: {}]   ;;  %s2863_s9 = inlined_call_operand.vmem [shape: f32[8,4], index: 9, kind: input, shape index: {}]   ;;  %s2864_s10 = inlined_call_operand.vmem [shape: f32[8,8], index: 10, kind: input, shape index: {}]   ;;  %s2865_s11 = inlined_call_operand.vmem [shape: f32[8,8], index: 11, kind: input, shape index: {}]   ;;  %s2866_s12 = inlined_call_operand.vmem [shape: f32[8,1], index: 12, kind: input, shape index: {}]   ;;  %s2867_s13 = inlined_call_operand.vmem [shape: f32[9,8,8], index: 13, kind: input, shape index: {}]   ;;  %s2868_s14 = inlined_call_operand.vmem [shape: f32[8,1], index: 14, kind: input, shape index: {}]   ;;  %s2869_s15 = inlined_call_operand.vmem [shape: f32[8,1], index: 15, kind: input, shape index: {}]   ;;  %s2870_s16 = inlined_call_operand.vmem [shape: f32[8,1], index: 16, kind: input, shape index: {}]   ;;  %s2871_s17 = inlined_call_operand.hbm [shape: f32[8,128], index: 17, kind: output, shape index: {}]  }
   0x1   :  { %3002 = sst [smem:[#allocation93_spill]] %s2854_s0 }
   0x2   :  { %3003 = sst [smem:[#allocation94_spill]] %s2855_s1 }
   0x3   :  { %22 = vsyncpa [#allocation3], 0 }
   0x4   :  { %23 = vsyncpa [#allocation4], 0  ;;  %s3004_s26 = sld [smem:[#allocation94_spill]]  ;;  %s1892_s28 = smov [#allocation2]  }
   0x5   :  { %s32_s29 = sshll.u32 %s1892_s28, 4  ;;  %s1893_s0 = smov 128   ;;  %s33_s29 = int_to_ptr.vmem [resolvable:$true] %s32_s29 }
   0x6   :  { %s1894_s30 = smov 8  }
   0xa   :  { %s30_s27 = sshll.u32 %s3004_s26, 4  ;;  %s31_s27 = int_to_ptr.hbm [resolvable:$true] %s30_s27 }
   0xb   :  { %38 = dma.hbm_to_vmem [thread:$0]  %s31_s27, 18432, %s33_s29, [#allocation3], %s1893_s0, %s1893_s0, %s1894_s30  }
   0xc   :  { %1888 = dma.done.wait [#allocation3], 18432  }
   0xd   :  { %1889 = vsyncadd [#allocation3], 4294948864  ;;  %vm79_vm0 = vcmask 1043456   ;;  %vm75_vm1 = vcmask 31744   ;;  %s3005_s1 = sld [smem:[#allocation93_spill]]  ;;  %v74_v1 = vld [vmem:[%s2856_s2] sm:$0xff] }
   0xe   :  { %v1691_v2 = vld [vmem:[%s2856_s2 + $0x8] sm:$0xff]  ;;  %v1694_v3 = vld [vmem:[%s2856_s2 + $0x10] sm:$0xff]  ;;  %v2009_v4 = vld [vmem:[#allocation2 + $0xf8] sm:$0xff]  ;;  %vm654_vm3 = vcmask 64512  }
   0xf   :  { %3007 = vst [vmem:[#allocation9_spill] sm:$0xff] %v2009_v4  ;;  %v2013_v5 = vld [vmem:[#allocation2 + $0x78] sm:$0xff]  ;;  %v2015_v6 = vld [vmem:[#allocation2 + $0xf0] sm:$0xff]  ;;  %v2024_v8 = vld [vmem:[#allocation2 + $0xe8] sm:$0xff] }
  0x10   :  { %3008 = vst [vmem:[#allocation10_spill] sm:$0xff] %v2015_v6  ;;  %v2020_v7 = vld [vmem:[#allocation2 + $0x70] sm:$0xff]  ;;  %v2029_v9 = vld [vmem:[#allocation2 + $0x68] sm:$0xff]  ;;  %v2031_v10 = vld [vmem:[#allocation2 + $0x178] sm:$0xff] }
  0x11   :  { %3009 = vst [vmem:[#allocation11_spill] sm:$0xff] %v2024_v8  ;;  %v2034_v11 = vld [vmem:[#allocation2 + $0xe0] sm:$0xff]  ;;  %243 = vmatpush.msra.mxu1 %v2031_v10  ;;  %v2037_v12 = vld [vmem:[#allocation2 + $0x170] sm:$0xff]  ;;  %v2039_v13 = vld [vmem:[#allocation2 + $0x1f8] sm:$0xff] }
  0x12   :  { %3010 = vst [vmem:[#allocation12_spill] sm:$0xff] %v2034_v11  ;;  %v2042_v14 = vld [vmem:[#allocation2 + $0x60] sm:$0xff]  ;;  %v2045_v15 = vld [vmem:[#allocation2 + $0x168] sm:$0xff]  ;;  %v2047_v16 = vld [vmem:[#allocation2 + $0x1f0] sm:$0xff] }
  0x13   :  { %v1994_v0 = vld [vmem:[%s3005_s1] sm:$0xf]  ;;  %3011 = vst [vmem:[#allocation13_spill] sm:$0xff] %v2039_v13  ;;  %v2050_v17 = vld [vmem:[#allocation2 + $0xd8] sm:$0xff]  ;;  %244 = vmatpush.msra.mxu1 %v2037_v12  ;;  %v2060_v20 = vld [vmem:[#allocation2 + $0x1e8] sm:$0xff] }
  0x14   :  { %3006 = vst [vmem:[#allocation8_spill] sm:$0xff] %v1994_v0  ;;  %1689 = vmatpush.msk.msra.mxu2 %vm79_vm0, %v1994_v0  ;;  %1692 = vmatpush.msk.msra.mxu3 %vm79_vm0, %v1994_v0  ;;  %v1697_v18 = vld [vmem:[%s2856_s2 + $0x18] sm:$0xff]  ;;  %v2063_v21 = vld [vmem:[#allocation2 + $0xd0] sm:$0xff]  ;;  %v2066_v22 = vld [vmem:[#allocation2 + $0x160] sm:$0xff] }
  0x15   :  { %1690 = vmatmul.msk.f32.vlgmr.msra.gmra.mxu2 %vm75_vm1, %v74_v1  ;;  %1693 = vmatmul.msk.f32.vlgmr.msra.gmra.mxu3 %vm75_vm1, %v1691_v2  ;;  %3012 = vst [vmem:[#allocation14_spill] sm:$0xff] %v2047_v16  ;;  %v2057_v19 = vld [vmem:[#allocation2 + $0x58] sm:$0xff]  ;;  %v2069_v23 = vld [vmem:[#allocation2 + $0x50] sm:$0xff]  ;;  %v2072_v24 = vld [vmem:[#allocation2 + $0x1e0] sm:$0xff] }
  0x16   :  { %1695 = vmatpush.msk.msra.mxu0 %vm79_vm0, %v1994_v0  ;;  %161 = vmatpush.msrb.mxu2 %v2009_v4  ;;  %3013 = vst [vmem:[#allocation15_spill] sm:$0xff] %v2050_v17  ;;  %v2076_v25 = vld [vmem:[#allocation2 + $0xc8] sm:$0xff]  ;;  %v2078_v26 = vld [vmem:[#allocation2 + $0x158] sm:$0xff]  ;;  %v2087_v29 = vld [vmem:[#allocation2 + $0xc0] sm:$0xff] }
  0x17   :  { %1696 = vmatmul.msk.f32.vlgmr.msra.gmra.mxu0 %vm75_vm1, %v1694_v3  ;;  %181 = vmatpush.msrb.mxu3 %v2013_v5  ;;  %3014 = vst [vmem:[#allocation16_spill] sm:$0xff] %v2060_v20  ;;  %v2081_v27 = vld [vmem:[#allocation2 + $0x48] sm:$0xff]  ;;  %v2084_v28 = vld [vmem:[#allocation2 + $0x1d8] sm:$0xff]  ;;  %v2090_v30 = vld [vmem:[#allocation2 + $0x150] sm:$0xff] }
  0x18   :  { %1698 = vmatpush.msk.msrb.mxu0 %vm79_vm0, %v1994_v0  ;;  %162 = vmatpush.msrb.mxu2 %v2015_v6  ;;  %3015 = vst [vmem:[#allocation17_spill] sm:$0xff] %v2063_v21  ;;  %v2093_v31 = vld [vmem:[#allocation2 + $0x40] sm:$0xff]  ;;  %v2096_v32 = vld [vmem:[#allocation2 + $0x1d0] sm:$0xff]  ;;  %v2099_v33 = vld [vmem:[#allocation2 + $0xb8] sm:$0xff] }
  0x19   :  { %182 = vmatpush.msrb.mxu3 %v2020_v7  ;;  %245 = vmatpush.msra.mxu1 %v2045_v15  ;;  %3016 = vst [vmem:[#allocation18_spill] sm:$0xff] %v2072_v24  ;;  %v2102_v34 = vld [vmem:[#allocation2 + $0x148] sm:$0xff]  ;;  %v2105_v35 = vld [vmem:[#allocation2 + $0x38] sm:$0xff]  ;;  %v2111_v37 = vld [vmem:[#allocation2 + $0xb0] sm:$0xff] }
  0x1a   :  { %163 = vmatpush.msrb.mxu2 %v2024_v8  ;;  %306 = vmatpush.msra.mxu0 %v2039_v13  ;;  %3017 = vst [vmem:[#allocation19_spill] sm:$0xff] %v2076_v25  ;;  %v2108_v36 = vld [vmem:[#allocation2 + $0x1c8] sm:$0xff]  ;;  %v2114_v38 = vld [vmem:[#allocation2 + $0x140] sm:$0xff]  ;;  %v2117_v39 = vld [vmem:[#allocation2 + $0x30] sm:$0xff] }
  0x1b   :  { %183 = vmatpush.msrb.mxu3 %v2029_v9  ;;  %246 = vmatpush.msra.mxu1 %v2066_v22  ;;  %3018 = vst [vmem:[#allocation20_spill] sm:$0xff] %v2084_v28  ;;  %v2120_v40 = vld [vmem:[#allocation2 + $0x1c0] sm:$0xff]  ;;  %v2123_v41 = vld [vmem:[#allocation2 + $0xa8] sm:$0xff]  ;;  %v2126_v42 = vld [vmem:[#allocation2 + $0x138] sm:$0xff] }
  0x1c   :  { %164 = vmatpush.msrb.mxu2 %v2034_v11  ;;  %307 = vmatpush.msra.mxu0 %v2047_v16  ;;  %3019 = vst [vmem:[#allocation21_spill] sm:$0xff] %v2087_v29  ;;  %v2129_v43 = vld [vmem:[#allocation2 + $0x28] sm:$0xff]  ;;  %v2132_v44 = vld [vmem:[#allocation2 + $0x1b8] sm:$0xff]  ;;  %v2135_v45 = vld [vmem:[#allocation2 + $0xa0] sm:$0xff] }
  0x1d   :  { %184 = vmatpush.msrb.mxu3 %v2042_v14  ;;  %247 = vmatpush.msra.mxu1 %v2078_v26  ;;  %3020 = vst [vmem:[#allocation22_spill] sm:$0xff] %v2096_v32  ;;  %v2138_v46 = vld [vmem:[#allocation2 + $0x130] sm:$0xff]  ;;  %v2141_v47 = vld [vmem:[#allocation2 + $0x20] sm:$0xff]  ;;  %v2147_v49 = vld [vmem:[#allocation2 + $0x98] sm:$0xff] }
  0x1e   :  { %165 = vmatpush.msrb.mxu2 %v2050_v17  ;;  %308 = vmatpush.msra.mxu0 %v2060_v20  ;;  %3021 = vst [vmem:[#allocation23_spill] sm:$0xff] %v2099_v33  ;;  %v2144_v48 = vld [vmem:[#allocation2 + $0x1b0] sm:$0xff]  ;;  %v2150_v50 = vld [vmem:[#allocation2 + $0x128] sm:$0xff]  ;;  %v2153_v51 = vld [vmem:[#allocation2 + $0x18] sm:$0xff] }
  0x1f   :  { %1699 = vmatmul.msk.f32.vlgmr.msrb.gmra.mxu0 %vm75_vm1, %v1697_v18  ;;  %185 = vmatpush.msrb.mxu3 %v2057_v19  ;;  %3022 = vst [vmem:[#allocation24_spill] sm:$0xff] %v2108_v36  ;;  %v2157_v52 = vld [vmem:[#allocation2 + $0x90] sm:$0xff]  ;;  %v2165_v54 = vld [vmem:[#allocation2 + $0x88] sm:$0xff]  ;;  %v2173_v56 = vld [vmem:[#allocation2 + $0x80] sm:$0xff] }
  0x20   :  { %166 = vmatpush.msrb.mxu2 %v2063_v21  ;;  %309 = vmatpush.msra.mxu0 %v2072_v24  ;;  %3023 = vst [vmem:[#allocation25_spill] sm:$0xff] %v2111_v37  ;;  %v2161_v53 = vld [vmem:[#allocation2 + $0x10] sm:$0xff]  ;;  %v2168_v55 = vld [vmem:[#allocation2 + $0x8] sm:$0xff]  ;;  %v2175_v57 = vld [vmem:[#allocation2] sm:$0xff] }
  0x21   :  { %186 = vmatpush.msrb.mxu3 %v2069_v23  ;;  %248 = vmatpush.msra.mxu1 %v2090_v30  ;;  %3024 = vst [vmem:[#allocation26_spill] sm:$0xff] %v2120_v40  ;;  %v2177_v58 = vld [vmem:[#allocation2 + $0x120] sm:$0xff]  ;;  %v2181_v59 = vld [vmem:[#allocation2 + $0x1a8] sm:$0xff]  ;;  %v2185_v60 = vld [vmem:[#allocation2 + $0x118] sm:$0xff] }
  0x22   :  { %167 = vmatpush.msrb.mxu2 %v2076_v25  ;;  %310 = vmatpush.msra.mxu0 %v2084_v28  ;;  %3025 = vst [vmem:[#allocation27_spill] sm:$0xff] %v2123_v41  ;;  %v2187_v61 = vld [vmem:[#allocation2 + $0x1a0] sm:$0xff]  ;;  %v2189_v62 = vld [vmem:[#allocation2 + $0x110] sm:$0xff]  ;;  %v2191_v63 = vld [vmem:[#allocation2 + $0x198] sm:$0xff] }
  0x23   :  { %187 = vmatpush.msrb.mxu3 %v2081_v27  ;;  %249 = vmatpush.msra.mxu1 %v2102_v34  ;;  %3026 = vst [vmem:[#allocation28_spill] sm:$0xff] %v2132_v44  ;;  %v2197_v1 = vld [vmem:[#allocation2 + $0x108] sm:$0xff]  ;;  %v2199_v2 = vld [vmem:[#allocation2 + $0x190] sm:$0xff]  ;;  %v2203_v3 = vld [vmem:[#allocation2 + $0x100] sm:$0xff] }
  0x24   :  { %168 = vmatpush.msrb.mxu2 %v2087_v29  ;;  %311 = vmatpush.msra.mxu0 %v2096_v32  ;;  %3027 = vst [vmem:[#allocation29_spill] sm:$0xff] %v2135_v45  ;;  %v2205_v18 = vld [vmem:[#allocation2 + $0x188] sm:$0xff]  ;;  %v2278_v28 = vld [vmem:[#allocation2 + $0x2f0] sm:$0xff]  ;;  %v2307_v29 = vld [vmem:[#allocation2 + $0x2c0] sm:$0xff] }
  0x25   :  { %188 = vmatpush.msrb.mxu3 %v2093_v31  ;;  %250 = vmatpush.msra.mxu1 %v2114_v38  ;;  %3028 = vst [vmem:[#allocation30_spill] sm:$0xff] %v2144_v48  ;;  %v2301_v24 = vld [vmem:[#allocation2 + $0x2c8] sm:$0xff]  ;;  %v2309_v20 = vld [vmem:[#allocation2 + $0x360] sm:$0xff]  ;;  %v2317_v25 = vld [vmem:[#allocation2 + $0x218] sm:$0xff] }
  0x26   :  { %169 = vmatpush.msrb.mxu2 %v2099_v33  ;;  %312 = vmatpush.msra.mxu0 %v2108_v36  ;;  %3029 = vst [vmem:[#allocation31_spill] sm:$0xff] %v2147_v49  ;;  %v2261_v36 = vld [vmem:[#allocation2 + $0x3f8] sm:$0xff]  ;;  %v2298_v33 = vld [vmem:[#allocation2 + $0x2d0] sm:$0xff]  ;;  %v2325_v13 = vld [vmem:[#allocation2 + $0x3e0] sm:$0xff] }
  0x27   :  { %189 = vmatpush.msrb.mxu3 %v2105_v35  ;;  %251 = vmatpush.msra.mxu1 %v2126_v42  ;;  %3030 = vst [vmem:[#allocation32_spill] sm:$0xff] %v2157_v52  ;;  %v2319_v16 = vld [vmem:[#allocation2 + $0x2b8] sm:$0xff]  ;;  %v2329_v17 = vld [vmem:[#allocation2 + $0x210] sm:$0xff]  ;;  %v2341_v8 = vld [vmem:[#allocation2 + $0x208] sm:$0xff] }
  0x28   :  { %170 = vmatpush.msrb.mxu2 %v2111_v37  ;;  %313 = vmatpush.msra.mxu0 %v2120_v40  ;;  %3031 = vst [vmem:[#allocation33_spill] sm:$0xff] %v2165_v54  ;;  %v2250_v40 = vld [vmem:[#allocation2 + $0x238] sm:$0xff]  ;;  %v2349_v6 = vld [vmem:[#allocation2 + $0x3d0] sm:$0xff]  ;;  %v2353_v4 = vld [vmem:[#allocation2 + $0x200] sm:$0xff] }
  0x29   :  { %190 = vmatpush.msrb.mxu3 %v2117_v39  ;;  %252 = vmatpush.msra.mxu1 %v2138_v46  ;;  %3032 = vst [vmem:[#allocation34_spill] sm:$0xff] %v2173_v56  ;;  %v2274_v37 = vld [vmem:[#allocation2 + $0x2f8] sm:$0xff] }
  0x2a   :  { %171 = vmatpush.msrb.mxu2 %v2123_v41  ;;  %314 = vmatpush.msra.mxu0 %v2132_v44  ;;  %3033 = vst [vmem:[#allocation35_spill] sm:$0xff] %v2181_v59  ;;  %v2241_v44 = vld [vmem:[#allocation2 + $0x248] sm:$0xff]  ;;  %v2321_v21 = vld [vmem:[#allocation2 + $0x358] sm:$0xff] }
  0x2b   :  { %191 = vmatpush.msrb.mxu3 %v2129_v43  ;;  %253 = vmatpush.msra.mxu1 %v2150_v50  ;;  %3034 = vst [vmem:[#allocation36_spill] sm:$0xff] %v2187_v61  ;;  %v2263_v41 = vld [vmem:[#allocation2 + $0x228] sm:$0xff]  ;;  %v2337_v11 = vld [vmem:[#allocation2 + $0x3d8] sm:$0xff] }
  0x2c   :  { %172 = vmatpush.msrb.mxu2 %v2135_v45  ;;  %315 = vmatpush.msra.mxu0 %v2144_v48  ;;  %3035 = vst [vmem:[#allocation37_spill] sm:$0xff] %v2191_v63  ;;  %v2235_v48 = vld [vmem:[#allocation2 + $0x368] sm:$0xff] }
  0x2d   :  { %192 = vmatpush.msrb.mxu3 %v2141_v47  ;;  %254 = vmatpush.msra.mxu1 %v2177_v58  ;;  %3036 = vst [vmem:[#allocation38_spill] sm:$0xff] %v2199_v2 }
  0x2e   :  { %173 = vmatpush.msrb.mxu2 %v2147_v49  ;;  %316 = vmatpush.msra.mxu0 %v2181_v59  ;;  %3037 = vst [vmem:[#allocation39_spill] sm:$0xff] %v2205_v18  ;;  %v2221_v59 = vld [vmem:[#allocation2 + $0x268] sm:$0xff] }
  0x2f   :  { %193 = vmatpush.msrb.mxu3 %v2153_v51  ;;  %255 = vmatpush.msra.mxu1 %v2185_v60  ;;  %3041 = vst [vmem:[#allocation43_spill] sm:$0xff] %v2235_v48 }
  0x30   :  { %174 = vmatpush.msrb.mxu2 %v2157_v52  ;;  %317 = vmatpush.msra.mxu0 %v2187_v61  ;;  %v2211_v61 = vld [vmem:[#allocation2 + $0x180] sm:$0xff]  ;;  %v2237_v52 = vld [vmem:[#allocation2 + $0x250] sm:$0xff]  ;;  %3042 = vst [vmem:[#allocation44_spill] sm:$0xff] %v2261_v36 }
  0x31   :  { %194 = vmatpush.msrb.mxu3 %v2161_v53  ;;  %256 = vmatpush.msra.mxu1 %v2189_v62  ;;  %3038 = vst [vmem:[#allocation40_spill] sm:$0xff] %v2211_v61 }
  0x32   :  { %175 = vmatpush.msrb.mxu2 %v2165_v54  ;;  %318 = vmatpush.msra.mxu0 %v2191_v63  ;;  %v2216_v63 = vld [vmem:[#allocation2 + $0x278] sm:$0xff]  ;;  %3044 = vst [vmem:[#allocation46_spill] sm:$0xff] %v2298_v33 }
  0x33   :  { %195 = vmatpush.msrb.mxu3 %v2168_v55  ;;  %257 = vmatpush.msra.mxu1 %v2197_v1  ;;  %v2229_v54 = vld [vmem:[#allocation2 + $0x258] sm:$0xff]  ;;  %3045 = vst [vmem:[#allocation47_spill] sm:$0xff] %v2301_v24 }
  0x34   :  { %176 = vmatpush.msrb.mxu2 %v2173_v56  ;;  %319 = vmatpush.msra.mxu0 %v2199_v2  ;;  %v2219_v56 = vld [vmem:[#allocation2 + $0x270] sm:$0xff]  ;;  %v2224_v2 = vld [vmem:[#allocation2 + $0x260] sm:$0xff]  ;;  %3046 = vst [vmem:[#allocation48_spill] sm:$0xff] %v2307_v29 }
  0x35   :  { %196 = vmatpush.msrb.mxu3 %v2175_v57  ;;  %258 = vmatpush.msra.mxu1 %v2203_v3  ;;  %3047 = vst [vmem:[#allocation49_spill] sm:$0xff] %v2309_v20 }
  0x36   :  { %1701 = vmatpush.msk.msra.mxu2 %vm79_vm0, %v1994_v0  ;;  %320 = vmatpush.msra.mxu0 %v2205_v18  ;;  %v2227_v18 = vld [vmem:[#allocation2 + $0x378] sm:$0xff]  ;;  %3049 = vst [vmem:[#allocation51_spill] sm:$0xff] %v2317_v25 }
  0x37   :  { %1707 = vmatpush.msk.msrb.mxu1 %vm79_vm0, %v1994_v0  ;;  %369 = vmatpush.msra.mxu3 %v2216_v63  ;;  %3039 = vst [vmem:[#allocation41_spill] sm:$0xff] %v2227_v18 }
  0x38   :  { %321 = vmatpush.msra.mxu0 %v2211_v61  ;;  %v2232_v61 = vld [vmem:[#allocation2 + $0x370] sm:$0xff]  ;;  %3050 = vst [vmem:[#allocation52_spill] sm:$0xff] %v2319_v16 }
  0x39   :  { %370 = vmatpush.msra.mxu3 %v2219_v56  ;;  %3040 = vst [vmem:[#allocation42_spill] sm:$0xff] %v2232_v61 }
  0x3a   :  { %495 = vmatpush.msrb.mxu0 %v2227_v18  ;;  %v2245_v18 = vld [vmem:[#allocation2 + $0x240] sm:$0xff]  ;;  %3051 = vst [vmem:[#allocation53_spill] sm:$0xff] %v2321_v21 }
  0x3b   :  { %371 = vmatpush.msra.mxu3 %v2221_v59  ;;  %3052 = vst [vmem:[#allocation54_spill] sm:$0xff] %v2325_v13 }
  0x3c   :  { %496 = vmatpush.msrb.mxu0 %v2232_v61  ;;  %3053 = vst [vmem:[#allocation55_spill] sm:$0xff] %v2329_v17 }
  0x3d   :  { %372 = vmatpush.msra.mxu3 %v2224_v2  ;;  %3056 = vst [vmem:[#allocation58_spill] sm:$0xff] %v2337_v11 }
  0x3e   :  { %497 = vmatpush.msrb.mxu0 %v2235_v48  ;;  %v2253_v48 = vld [vmem:[#allocation2 + $0x230] sm:$0xff]  ;;  %3057 = vst [vmem:[#allocation59_spill] sm:$0xff] %v2341_v8 }
  0x3f   :  { %373 = vmatpush.msra.mxu3 %v2229_v54  ;;  %3060 = vst [vmem:[#allocation62_spill] sm:$0xff] %v2349_v6 }
  0x40   :  { %498 = vmatpush.msrb.mxu0 %v2309_v20  ;;  %v2331_v20 = vld [vmem:[#allocation2 + $0x2b0] sm:$0xff]  ;;  %3061 = vst [vmem:[#allocation63_spill] sm:$0xff] %v2353_v4 }
  0x41   :  { %374 = vmatpush.msra.mxu3 %v2237_v52  ;;  %3054 = vst [vmem:[#allocation56_spill] sm:$0xff] %v2331_v20 }
  0x42   :  { %499 = vmatpush.msrb.mxu0 %v2321_v21  ;;  %v2343_v21 = vld [vmem:[#allocation2 + $0x2a8] sm:$0xff] }
  0x43   :  { %375 = vmatpush.msra.mxu3 %v2241_v44  ;;  %3058 = vst [vmem:[#allocation60_spill] sm:$0xff] %v2343_v21 }
  0x45   :  { %376 = vmatpush.msra.mxu3 %v2245_v18 }
  0x47   :  { %377 = vmatpush.msra.mxu3 %v2250_v40 }
  0x49   :  { %378 = vmatpush.msra.mxu3 %v2253_v48 }
  0x4b   :  { %379 = vmatpush.msra.mxu3 %v2263_v41 }
  0x94   :  { %v223_v49 = vpop.f32.mrf.mxu0 }
  0x95   :  { %259 = vmatmul.f32.vlgmr.msra.gmra.mxu1 %v223_v49  ;;  %v1706_v49 = vld [vmem:[%s2856_s2 + $0x30] sm:$0xff] }
  0x96   :  { %1710 = vmatpush.msk.msra.mxu1 %vm79_vm0, %v1994_v0 }
  0x98   :  { %v100_v61 = vpop.f32.mrf.mxu2  ;;  %v141_v45 = vpop.f32.mrf.mxu3 }
  0x99   :  { %177 = vmatmul.f32.vlgmr.msrb.gmra.mxu2 %v141_v45  ;;  %197 = vmatmul.f32.vlgmr.msrb.gmra.mxu3 %v100_v61  ;;  %v2267_v45 = vld [vmem:[#allocation2 + $0x3f0] sm:$0xff]  ;;  %v1700_v61 = vld [vmem:[%s2856_s2 + $0x20] sm:$0xff] }
  0x9a   :  { %1704 = vmatpush.msk.msrb.mxu2 %vm79_vm0, %v1994_v0  ;;  %3043 = vst [vmem:[#allocation45_spill] sm:$0xff] %v2267_v45 }
  0x9c   :  { %v286_v32 = vpop.f32.mrf.mxu0 }
  0x9d   :  { %322 = vmatmul.f32.vlgmr.msra.gmra.mxu0 %v286_v32  ;;  %1708 = vmatmul.msk.f32.vlgmr.msrb.gmra.mxu1 %vm75_vm1, %v1706_v49  ;;  %v1709_v32 = vld [vmem:[%s2856_s2 + $0x38] sm:$0xff]  ;;  %v2284_v49 = vld [vmem:[#allocation2 + $0x2e8] sm:$0xff] }
  0x9e   :  { %558 = vmatpush.msrb.mxu1 %v2261_v36  ;;  %v2288_v36 = vld [vmem:[#allocation2 + $0x2e0] sm:$0xff] }
  0xa0   :  { %559 = vmatpush.msrb.mxu1 %v2267_v45  ;;  %v2294_v45 = vld [vmem:[#allocation2 + $0x2d8] sm:$0xff] }
  0xa1   :  { %1702 = vmatmul.msk.f32.vlgmr.msra.gmra.mxu2 %vm75_vm1, %v1700_v61  ;;  %v1703_v61 = vld [vmem:[%s2856_s2 + $0x28] sm:$0xff] }
  0xa2   :  { %432 = vmatpush.msra.mxu2 %v2274_v37 }
  0xa4   :  { %433 = vmatpush.msra.mxu2 %v2278_v28 }
  0xa5   :  { %1711 = vmatmul.msk.f32.vlgmr.msra.gmra.mxu1 %vm75_vm1, %v1709_v32  ;;  %v2305_v32 = vld [vmem:[#allocation2 + $0x220] sm:$0xff] }
  0xa6   :  { %434 = vmatpush.msra.mxu2 %v2284_v49  ;;  %380 = vmatpush.msra.mxu3 %v2305_v32 }
  0xa8   :  { %435 = vmatpush.msra.mxu2 %v2288_v36  ;;  %381 = vmatpush.msra.mxu3 %v2317_v25 }
  0xa9   :  { %1705 = vmatmul.msk.f32.vlgmr.msrb.gmra.mxu2 %vm75_vm1, %v1703_v61  ;;  %v2313_v61 = vld [vmem:[#allocation2 + $0x3e8] sm:$0xff] }
  0xaa   :  { %436 = vmatpush.msra.mxu2 %v2294_v45  ;;  %3048 = vst [vmem:[#allocation50_spill] sm:$0xff] %v2313_v61  ;;  %560 = vmatpush.msrb.mxu1 %v2313_v61  ;;  %v2333_v61 = vld [vmem:[#allocation2 + $0x350] sm:$0xff] }
  0xab   :  { %3055 = vst [vmem:[#allocation57_spill] sm:$0xff] %v2333_v61  ;;  %382 = vmatpush.msra.mxu3 %v2329_v17  ;;  %500 = vmatpush.msrb.mxu0 %v2333_v61  ;;  %v2355_v61 = vld [vmem:[#allocation2 + $0x2a0] sm:$0xff] }
  0xac   :  { %437 = vmatpush.msra.mxu2 %v2298_v33  ;;  %561 = vmatpush.msrb.mxu1 %v2325_v13  ;;  %v2345_v13 = vld [vmem:[#allocation2 + $0x348] sm:$0xff]  ;;  %3062 = vst [vmem:[#allocation64_spill] sm:$0xff] %v2355_v61 }
  0xad   :  { %3059 = vst [vmem:[#allocation61_spill] sm:$0xff] %v2345_v13  ;;  %383 = vmatpush.msra.mxu3 %v2341_v8  ;;  %501 = vmatpush.msrb.mxu0 %v2345_v13  ;;  %v2367_v13 = vld [vmem:[#allocation2 + $0x338] sm:$0xff]  ;;  %v2425_v33 = vld [vmem:[#allocation2 + $0x388] sm:$0xff] }
  0xae   :  { %438 = vmatpush.msra.mxu2 %v2301_v24  ;;  %562 = vmatpush.msrb.mxu1 %v2337_v11  ;;  %v2357_v11 = vld [vmem:[#allocation2 + $0x340] sm:$0xff]  ;;  %3066 = vst [vmem:[#allocation68_spill] sm:$0xff] %v2367_v13  ;;  %v2376_v24 = vld [vmem:[#allocation2 + $0x3b8] sm:$0xff] }
  0xaf   :  { %3063 = vst [vmem:[#allocation65_spill] sm:$0xff] %v2357_v11  ;;  %384 = vmatpush.msra.mxu3 %v2353_v4  ;;  %502 = vmatpush.msrb.mxu0 %v2357_v11  ;;  %v2385_v11 = vld [vmem:[#allocation2 + $0x328] sm:$0xff] }
  0xb0   :  { %439 = vmatpush.msra.mxu2 %v2307_v29  ;;  %563 = vmatpush.msrb.mxu1 %v2349_v6  ;;  %v2369_v6 = vld [vmem:[#allocation2 + $0x3c0] sm:$0xff]  ;;  %v2374_v29 = vld [vmem:[#allocation2 + $0x330] sm:$0xff]  ;;  %3070 = vst [vmem:[#allocation72_spill] sm:$0xff] %v2376_v24 }
  0xb1   :  { %3067 = vst [vmem:[#allocation69_spill] sm:$0xff] %v2369_v6  ;;  %1713 = vmatpush.msk.msrb.mxu3 %vm79_vm0, %v1994_v0  ;;  %503 = vmatpush.msrb.mxu0 %v2367_v13  ;;  %v2394_v13 = vld [vmem:[#allocation2 + $0x280] sm:$0xff]  ;;  %v2398_v0 = vld [vmem:[#allocation2 + $0x3a8] sm:$0xff] }
  0xb2   :  { %440 = vmatpush.msra.mxu2 %v2319_v16  ;;  %v2372_v16 = vld [vmem:[#allocation2 + $0x290] sm:$0xff]  ;;  %3069 = vst [vmem:[#allocation71_spill] sm:$0xff] %v2374_v29 }
  0xb3   :  { %3068 = vst [vmem:[#allocation70_spill] sm:$0xff] %v2372_v16  ;;  %504 = vmatpush.msrb.mxu0 %v2374_v29  ;;  %v2403_v29 = vld [vmem:[#allocation2 + $0x318] sm:$0xff] }
  0xb4   :  { %441 = vmatpush.msra.mxu2 %v2331_v20  ;;  %v2361_v20 = vld [vmem:[#allocation2 + $0x3c8] sm:$0xff]  ;;  %3072 = vst [vmem:[#allocation74_spill] sm:$0xff] %v2385_v11 }
  0xb5   :  { %3064 = vst [vmem:[#allocation66_spill] sm:$0xff] %v2361_v20  ;;  %564 = vmatpush.msrb.mxu1 %v2361_v20  ;;  %v2382_v20 = vld [vmem:[#allocation2 + $0x288] sm:$0xff]  ;;  %505 = vmatpush.msrb.mxu0 %v2385_v11  ;;  %v2409_v11 = vld [vmem:[#allocation2 + $0x398] sm:$0xff] }
  0xb6   :  { %442 = vmatpush.msra.mxu2 %v2343_v21  ;;  %v2365_v21 = vld [vmem:[#allocation2 + $0x298] sm:$0xff]  ;;  %3071 = vst [vmem:[#allocation73_spill] sm:$0xff] %v2382_v20 }
  0xb7   :  { %3065 = vst [vmem:[#allocation67_spill] sm:$0xff] %v2365_v21  ;;  %565 = vmatpush.msrb.mxu1 %v2369_v6  ;;  %v2396_v6 = vld [vmem:[#allocation2 + $0x320] sm:$0xff] }
  0xb8   :  { %443 = vmatpush.msra.mxu2 %v2355_v61  ;;  %3074 = vst [vmem:[#allocation76_spill] sm:$0xff] %v2394_v13  ;;  %506 = vmatpush.msrb.mxu0 %v2396_v6  ;;  %v2423_v61 = vld [vmem:[#allocation2 + $0x300] sm:$0xff] }
  0xb9   :  { %566 = vmatpush.msrb.mxu1 %v2376_v24  ;;  %3075 = vst [vmem:[#allocation77_spill] sm:$0xff] %v2396_v6  ;;  %v2405_v24 = vld [vmem:[#allocation2 + $0x3a0] sm:$0xff] }
  0xba   :  { %444 = vmatpush.msra.mxu2 %v2365_v21  ;;  %v2387_v21 = vld [vmem:[#allocation2 + $0x3b0] sm:$0xff]  ;;  %3076 = vst [vmem:[#allocation78_spill] sm:$0xff] %v2398_v0  ;;  %507 = vmatpush.msrb.mxu0 %v2403_v29 }
  0xbb   :  { %3073 = vst [vmem:[#allocation75_spill] sm:$0xff] %v2387_v21  ;;  %567 = vmatpush.msrb.mxu1 %v2387_v21  ;;  %v2413_v21 = vld [vmem:[#allocation2 + $0x308] sm:$0xff] }
  0xbc   :  { %445 = vmatpush.msra.mxu2 %v2372_v16  ;;  %3077 = vst [vmem:[#allocation79_spill] sm:$0xff] %v2403_v29  ;;  %v2415_v16 = vld [vmem:[#allocation2 + $0x390] sm:$0xff]  ;;  %v2432_v29 = vld [vmem:[#allocation2 + $0x380] sm:$0xff] }
  0xbd   :  { %568 = vmatpush.msrb.mxu1 %v2398_v0  ;;  %3078 = vst [vmem:[#allocation80_spill] sm:$0xff] %v2405_v24  ;;  %v2421_v0 = vld [vmem:[#allocation2 + $0x470] sm:$0xff] }
  0xbe   :  { %446 = vmatpush.msra.mxu2 %v2382_v20  ;;  %v2407_v20 = vld [vmem:[#allocation2 + $0x310] sm:$0xff]  ;;  %3080 = vst [vmem:[#allocation82_spill] sm:$0xff] %v2409_v11 }
  0xbf   :  { %3079 = vst [vmem:[#allocation81_spill] sm:$0xff] %v2407_v20  ;;  %569 = vmatpush.msrb.mxu1 %v2405_v24  ;;  %508 = vmatpush.msrb.mxu0 %v2407_v20  ;;  %v2430_v24 = vld [vmem:[#allocation2 + $0x468] sm:$0xff] }
  0xc0   :  { %447 = vmatpush.msra.mxu2 %v2394_v13  ;;  %3081 = vst [vmem:[#allocation83_spill] sm:$0xff] %v2413_v21  ;;  %v2417_v13 = vld [vmem:[#allocation2 + $0x478] sm:$0xff] }
  0xc1   :  { %3082 = vst [vmem:[#allocation84_spill] sm:$0xff] %v2415_v16  ;;  %570 = vmatpush.msrb.mxu1 %v2409_v11  ;;  %509 = vmatpush.msrb.mxu0 %v2413_v21  ;;  %v2437_v11 = vld [vmem:[#allocation2 + $0x460] sm:$0xff] }
  0xc2   :  { %3083 = vst [vmem:[#allocation85_spill] sm:$0xff] %v2417_v13  ;;  %621 = vmatpush.msrb.mxu2 %v2417_v13  ;;  %v2441_v13 = vld [vmem:[#allocation2 + $0x458] sm:$0xff] }
  0xc3   :  { %3084 = vst [vmem:[#allocation86_spill] sm:$0xff] %v2421_v0  ;;  %571 = vmatpush.msrb.mxu1 %v2415_v16  ;;  %510 = vmatpush.msrb.mxu0 %v2423_v61  ;;  %v2445_v16 = vld [vmem:[#allocation2 + $0x450] sm:$0xff] }
  0xc4   :  { %3085 = vst [vmem:[#allocation87_spill] sm:$0xff] %v2423_v61  ;;  %622 = vmatpush.msrb.mxu2 %v2421_v0  ;;  %v2449_v0 = vld [vmem:[#allocation2 + $0x448] sm:$0xff] }
  0xc5   :  { %3086 = vst [vmem:[#allocation88_spill] sm:$0xff] %v2425_v33  ;;  %572 = vmatpush.msrb.mxu1 %v2425_v33 }
  0xc6   :  { %3087 = vst [vmem:[#allocation89_spill] sm:$0xff] %v2430_v24  ;;  %623 = vmatpush.msrb.mxu2 %v2430_v24 }
  0xc7   :  { %3088 = vst [vmem:[#allocation90_spill] sm:$0xff] %v2432_v29  ;;  %573 = vmatpush.msrb.mxu1 %v2432_v29 }
  0xc8   :  { %3089 = vst [vmem:[#allocation91_spill] sm:$0xff] %v2437_v11  ;;  %624 = vmatpush.msrb.mxu2 %v2437_v11  ;;  %v2453_v11 = vld [vmem:[#allocation2 + $0x440] sm:$0xff] }
  0xc9   :  { %3090 = vst [vmem:[#allocation92_spill] sm:$0xff] %v2441_v13  ;;  %777 = vmatpush.msra.mxu1 %v2013_v5 }
  0xca   :  { %625 = vmatpush.msrb.mxu2 %v2441_v13  ;;  %v2459_v13 = vld [vmem:[#allocation2 + $0x438] sm:$0xff] }
  0xcb   :  { %778 = vmatpush.msra.mxu1 %v2020_v7  ;;  %v2463_v7 = vld [vmem:[#allocation2 + $0x430] sm:$0xff] }
  0xcc   :  { %626 = vmatpush.msrb.mxu2 %v2445_v16 }
  0xcd   :  { %779 = vmatpush.msra.mxu1 %v2029_v9  ;;  %v2467_v9 = vld [vmem:[#allocation2 + $0x428] sm:$0xff] }
  0xce   :  { %627 = vmatpush.msrb.mxu2 %v2449_v0 }
  0xcf   :  { %780 = vmatpush.msra.mxu1 %v2042_v14 }
  0xd0   :  { %628 = vmatpush.msrb.mxu2 %v2453_v11 }
  0xd1   :  { %781 = vmatpush.msra.mxu1 %v2057_v19  ;;  %v2501_v19 = vld [vmem:[#allocation2 + $0x420] sm:$0xff] }
  0xd2   :  { %629 = vmatpush.msrb.mxu2 %v2459_v13 }
  0xd3   :  { %782 = vmatpush.msra.mxu1 %v2069_v23  ;;  %v2504_v23 = vld [vmem:[#allocation2 + $0x418] sm:$0xff] }
  0xd4   :  { %630 = vmatpush.msrb.mxu2 %v2463_v7 }
  0xd5   :  { %783 = vmatpush.msra.mxu1 %v2081_v27  ;;  %v2506_v27 = vld [vmem:[#allocation2 + $0x410] sm:$0xff] }
  0xd6   :  { %631 = vmatpush.msrb.mxu2 %v2467_v9 }
  0xd7   :  { %784 = vmatpush.msra.mxu1 %v2093_v31  ;;  %v2513_v31 = vld [vmem:[#allocation2 + $0x400] sm:$0xff] }
  0xd8   :  { %632 = vmatpush.msrb.mxu2 %v2501_v19 }
  0xd9   :  { %785 = vmatpush.msra.mxu1 %v2105_v35  ;;  %v1895_v35 = vmov 0  }
  0xda   :  { %633 = vmatpush.msrb.mxu2 %v2504_v23  ;;  %1762 = vset.pattern.permute.xlu0 %v1895_v35 }
  0xdb   :  { %786 = vmatpush.msra.mxu1 %v2117_v39  ;;  %1763 = vset.pattern.permute.xlu1 %v1895_v35  ;;  %v3093_v39 = vld [vmem:[#allocation48_spill] sm:$0xff] }
  0xdc   :  { %634 = vmatpush.msrb.mxu2 %v2506_v27  ;;  %1764 = vset.pattern.permute.xlu2 %v1895_v35 }
  0xdd   :  { %787 = vmatpush.msra.mxu1 %v2129_v43  ;;  %v3096_v43 = vld [vmem:[#allocation60_spill] sm:$0xff] }
  0xdf   :  { %788 = vmatpush.msra.mxu1 %v2141_v47  ;;  %v3098_v47 = vld [vmem:[#allocation67_spill] sm:$0xff] }
  0xe1   :  { %789 = vmatpush.msra.mxu1 %v2153_v51  ;;  %v3100_v51 = vld [vmem:[#allocation73_spill] sm:$0xff] }
  0xe3   :  { %790 = vmatpush.msra.mxu1 %v2161_v53 }
  0xe5   :  { %791 = vmatpush.msra.mxu1 %v2168_v55 }
  0xe7   :  { %792 = vmatpush.msra.mxu1 %v2175_v57 }
 0x112   :  { %v260_v6 = vpop.f32.mrf.mxu1 }
 0x11a   :  { %v475_v21 = vpop.f32.mrf.mxu1 }
 0x11b   :  { %511 = vmatmul.f32.vlgmr.msrb.gmra.mxu0 %v475_v21 }
 0x11c   :  { %v178_v33 = vpop.f32.mrf.mxu2  ;;  %v198_v24 = vpop.f32.mrf.mxu3 }
 0x11d   :  { %v199_v29 = vadd.f32 %v198_v24, %v178_v33  ;;  %v642_v33 = vld [vmem:[%s2857_s3] sm:$0xff] }
 0x11e   :  { %645 = vperm.xlu0 %1762, %v642_v33  }
 0x11f   :  { %v2457_v5 = vadd.f32 %v260_v6, %v199_v29  ;;  %v1712_v6 = vld [vmem:[%s2856_s2 + $0x40] sm:$0xff]  ;;  %v2509_v29 = vld [vmem:[#allocation2 + $0x408] sm:$0xff] }
 0x120   :  { %635 = vmatpush.msrb.mxu2 %v2509_v29 }
 0x122   :  { %v538_v21 = vpop.f32.mrf.mxu1  ;;  %636 = vmatpush.msrb.mxu2 %v2513_v31 }
 0x123   :  { %574 = vmatmul.f32.vlgmr.msrb.gmra.mxu1 %v538_v21  ;;  %v653_v21 = vld [vmem:[%s2859_s5] sm:$0xff] }
 0x124   :  { %v349_v24 = vpop.f32.mrf.mxu2  ;;  %914 = vmatpush.msrb.mxu1 %v2216_v63 }
 0x125   :  { %385 = vmatmul.f32.vlgmr.msra.gmra.mxu3 %v349_v24 }
 0x126   :  { %915 = vmatpush.msrb.mxu1 %v2219_v56 }
 0x128   :  { %916 = vmatpush.msrb.mxu1 %v2221_v59 }
 0x12a   :  { %917 = vmatpush.msrb.mxu1 %v2224_v2 }
 0x12c   :  { %v412_v14 = vpop.f32.mrf.mxu2  ;;  %918 = vmatpush.msrb.mxu1 %v2229_v54 }
 0x12d   :  { %448 = vmatmul.f32.vlgmr.msra.gmra.mxu2 %v412_v14  ;;  %1714 = vmatmul.msk.f32.vlgmr.msrb.gmra.mxu3 %vm75_vm1, %v1712_v6  ;;  %v3102_v6 = vld [vmem:[#allocation8_spill] sm:$0xff]  ;;  %v652_v14 = vld [vmem:[%s2858_s4] sm:$0xff] }
 0x12e   :  { %919 = vmatpush.msrb.mxu1 %v2237_v52  ;;  %822 = vmatpush.msra.mxu2 %v2031_v10  ;;  %v701_v10 = vld [vmem:[%s2860_s6] sm:$0xff]  ;;  %v3101_v52 = vld [vmem:[#allocation76_spill] sm:$0xff] }
 0x12f   :  { %704 = vperm.xlu0 %1762, %v701_v10  }
 0x130   :  { %920 = vmatpush.msrb.mxu1 %v2241_v44  ;;  %823 = vmatpush.msra.mxu2 %v2037_v12  ;;  %v323_v12 = vpop.f32.mrf.mxu0  ;;  %v3097_v44 = vld [vmem:[#allocation64_spill] sm:$0xff] }
 0x132   :  { %921 = vmatpush.msrb.mxu1 %v2245_v18  ;;  %824 = vmatpush.msra.mxu2 %v2045_v15  ;;  %v326_v15 = vadd.f32 %v323_v12, %v2457_v5 }
 0x134   :  { %922 = vmatpush.msrb.mxu1 %v2250_v40  ;;  %825 = vmatpush.msra.mxu2 %v2066_v22  ;;  %v3094_v40 = vld [vmem:[#allocation52_spill] sm:$0xff] }
 0x136   :  { %923 = vmatpush.msrb.mxu1 %v2253_v48  ;;  %826 = vmatpush.msra.mxu2 %v2078_v26  ;;  %v3099_v48 = vld [vmem:[#allocation70_spill] sm:$0xff] }
 0x138   :  { %924 = vmatpush.msrb.mxu1 %v2263_v41  ;;  %827 = vmatpush.msra.mxu2 %v2090_v30  ;;  %v3095_v41 = vld [vmem:[#allocation56_spill] sm:$0xff] }
 0x13a   :  { %925 = vmatpush.msrb.mxu1 %v2305_v32  ;;  %828 = vmatpush.msra.mxu2 %v2102_v34  ;;  %v3091_v34 = vld [vmem:[#allocation46_spill] sm:$0xff] }
 0x13c   :  { %926 = vmatpush.msrb.mxu1 %v2317_v25  ;;  %829 = vmatpush.msra.mxu2 %v2114_v38  ;;  %v3092_v38 = vld [vmem:[#allocation47_spill] sm:$0xff] }
 0x13e   :  { %927 = vmatpush.msrb.mxu1 %v2329_v17  ;;  %830 = vmatpush.msra.mxu2 %v2126_v42 }
 0x140   :  { %928 = vmatpush.msrb.mxu1 %v2341_v8  ;;  %831 = vmatpush.msra.mxu2 %v2138_v46  ;;  %v3141_v8 = vld [vmem:[#allocation61_spill] sm:$0xff] }
 0x142   :  { %929 = vmatpush.msrb.mxu1 %v2353_v4  ;;  %832 = vmatpush.msra.mxu2 %v2150_v50  ;;  %v3139_v4 = vld [vmem:[#allocation53_spill] sm:$0xff] }
 0x144   :  { %833 = vmatpush.msra.mxu2 %v2177_v58 }
 0x146   :  { %834 = vmatpush.msra.mxu2 %v2185_v60 }
 0x148   :  { %835 = vmatpush.msra.mxu2 %v2189_v62 }
 0x14a   :  { %836 = vmatpush.msra.mxu2 %v2197_v1 }
 0x14c   :  { %837 = vmatpush.msra.mxu2 %v2203_v3 }
 0x190   :  { %v646_v18 = vpop.permute.xlu0 %645 }
 0x198   :  { %v512_v55 = vpop.f32.mrf.mxu0 }
 0x1a0   :  { %v575_v57 = vpop.f32.mrf.mxu1 }
 0x1a1   :  { %v705_v12 = vpop.permute.xlu0 %704 }
 0x1a8   :  { %v386_v22 = vpop.f32.mrf.mxu3 }
 0x1a9   :  { %v389_v26 = vadd.f32 %v386_v22, %v326_v15  ;;  %v708_v22 = vld [vmem:[%s2861_s7] sm:$0xff] }
 0x1b0   :  { %v601_v30 = vpop.f32.mrf.mxu3  ;;  %v449_v53 = vpop.f32.mrf.mxu2 }
 0x1b1   :  { %637 = vmatmul.f32.vlgmr.msrb.gmra.mxu2 %v601_v30  ;;  %v452_v54 = vadd.f32 %v449_v53, %v389_v26  ;;  %v1719_v26 = vld [vmem:[%s2861_s7 + $0x8] sm:$0xff]  ;;  %v3103_v30 = vld [vmem:[#allocation9_spill] sm:$0xff]  ;;  %v3104_v53 = vld [vmem:[#allocation10_spill] sm:$0xff] }
 0x1b2   :  { %960 = vmatpush.msrb.mxu2 %v2274_v37 }
 0x1b3   :  { %v515_v56 = vadd.f32 %v512_v55, %v452_v54  ;;  %v3105_v54 = vld [vmem:[#allocation11_spill] sm:$0xff]  ;;  %v1721_v55 = vld [vmem:[%s2861_s7 + $0x10] sm:$0xff] }
 0x1b4   :  { %961 = vmatpush.msrb.mxu2 %v2278_v28 }
 0x1b5   :  { %v578_v59 = vadd.f32 %v575_v57, %v515_v56  ;;  %v3106_v56 = vld [vmem:[#allocation12_spill] sm:$0xff]  ;;  %v3107_v57 = vld [vmem:[#allocation15_spill] sm:$0xff] }
 0x1b6   :  { %962 = vmatpush.msrb.mxu2 %v2284_v49 }
 0x1b8   :  { %963 = vmatpush.msrb.mxu2 %v2288_v36 }
 0x1ba   :  { %964 = vmatpush.msrb.mxu2 %v2294_v45 }
 0x1bc   :  { %965 = vmatpush.msrb.mxu2 %v3091_v34 }
 0x1be   :  { %966 = vmatpush.msrb.mxu2 %v3092_v38 }
 0x1c0   :  { %967 = vmatpush.msrb.mxu2 %v3093_v39 }
 0x1c2   :  { %968 = vmatpush.msrb.mxu2 %v3094_v40 }
 0x1c4   :  { %969 = vmatpush.msrb.mxu2 %v3095_v41 }
 0x1c6   :  { %970 = vmatpush.msrb.mxu2 %v3096_v43 }
 0x1c8   :  { %971 = vmatpush.msrb.mxu2 %v3097_v44 }
 0x1ca   :  { %972 = vmatpush.msrb.mxu2 %v3098_v47 }
 0x1cc   :  { %973 = vmatpush.msrb.mxu2 %v3099_v48 }
 0x1ce   :  { %974 = vmatpush.msrb.mxu2 %v3100_v51 }
 0x1d0   :  { %975 = vmatpush.msrb.mxu2 %v3101_v52 }
 0x234   :  { %v638_v63 = vpop.f32.mrf.mxu2 }
 0x235   :  { %v641_v2 = vadd.f32 %v638_v63, %v578_v59  ;;  %v3108_v59 = vld [vmem:[#allocation13_spill] sm:$0xff] }
 0x236   :  { %v3109_v63 = vld [vmem:[#allocation17_spill] sm:$0xff] }
 0x237   :  { %v648_v32 = vadd.f32 %v646_v18, %v641_v2  ;;  %v3110_v2 = vld [vmem:[#allocation14_spill] sm:$0xff]  ;;  %v3111_v18 = vld [vmem:[#allocation19_spill] sm:$0xff] }
 0x239   :  { %v650_v5 = vmul.f32 0.01, %v648_v32  ;;  %vm649_vm2 = vcmp.ge.f32.partialorder %v648_v32, 0.0 }
 0x23b   :  { %v2558_v24 = vsel %vm649_vm2, %v648_v32, %v650_v5  ;;  %v1723_v32 = vld [vmem:[%s2861_s7 + $0x18] sm:$0xff]  ;;  %v3112_v5 = vld [vmem:[#allocation16_spill] sm:$0xff] }
 0x23c   :  { %673 = vmatpush.msra.mxu3 %v2558_v24 }
 0x23d   :  { %1715 = vmatmul.msk.f32.vlgmr.msra.gmra.mxu3 %vm654_vm3, %v653_v21  ;;  %v3113_v21 = vld [vmem:[#allocation21_spill] sm:$0xff] }
 0x23e   :  { %1716 = vmatpush.msk.msrb.mxu3 %vm79_vm0, %v3102_v6  ;;  %v3114_v6 = vld [vmem:[#allocation18_spill] sm:$0xff] }
 0x245   :  { %1717 = vmatmul.msk.f32.vlgmr.msrb.gmra.mxu3 %vm75_vm1, %v652_v14  ;;  %v3115_v14 = vld [vmem:[#allocation23_spill] sm:$0xff] }
 0x2c0   :  { %v675_v33 = vpop.f32.mrf.mxu3 }
 0x2c8   :  { %v698_v35 = vpop.f32.mrf.mxu3 }
 0x2c9   :  { %v699_v10 = vadd.f32 %v698_v35, %v675_v33  ;;  %v3116_v33 = vld [vmem:[#allocation20_spill] sm:$0xff]  ;;  %v3117_v35 = vld [vmem:[#allocation25_spill] sm:$0xff] }
 0x2cb   :  { %v2568_v15 = vadd.f32 %v705_v12, %v699_v10  ;;  %v3118_v10 = vld [vmem:[#allocation22_spill] sm:$0xff]  ;;  %v3119_v12 = vld [vmem:[#allocation27_spill] sm:$0xff] }
 0x2cd   :  { %727 = vmatpush.msra.mxu0 %v2568_v15  ;;  %752 = vmatpush.msra.mxu3 %v2568_v15 }
 0x2ce   :  { %1718 = vmatmul.msk.f32.vlgmr.msra.gmra.mxu0 %vm654_vm3, %v708_v22  ;;  %1720 = vmatmul.msk.f32.vlgmr.msra.gmra.mxu3 %vm654_vm3, %v1719_v26  ;;  %v3120_v22 = vld [vmem:[#allocation24_spill] sm:$0xff]  ;;  %v3121_v26 = vld [vmem:[#allocation29_spill] sm:$0xff] }
 0x2cf   :  { %757 = vmatpush.msrb.mxu0 %v3103_v30  ;;  %817 = vmatpush.msrb.mxu3 %v2568_v15  ;;  %v3122_v30 = vld [vmem:[#allocation26_spill] sm:$0xff] }
 0x2d1   :  { %863 = vmatpush.msra.mxu3 %v2568_v15  ;;  %758 = vmatpush.msrb.mxu0 %v3104_v53  ;;  %v3123_v53 = vld [vmem:[#allocation31_spill] sm:$0xff] }
 0x2d3   :  { %759 = vmatpush.msrb.mxu0 %v3105_v54  ;;  %v3124_v54 = vld [vmem:[#allocation28_spill] sm:$0xff] }
 0x2d5   :  { %760 = vmatpush.msrb.mxu0 %v3106_v56  ;;  %v3126_v56 = vld [vmem:[#allocation30_spill] sm:$0xff] }
 0x2d6   :  { %1722 = vmatmul.msk.f32.vlgmr.msrb.gmra.mxu3 %vm654_vm3, %v1721_v55  ;;  %v3125_v55 = vld [vmem:[#allocation32_spill] sm:$0xff] }
 0x2d7   :  { %761 = vmatpush.msrb.mxu0 %v3107_v57  ;;  %868 = vmatpush.msrb.mxu3 %v3108_v59  ;;  %v3127_v59 = vld [vmem:[#allocation33_spill] sm:$0xff] }
 0x2d9   :  { %762 = vmatpush.msrb.mxu0 %v3109_v63  ;;  %869 = vmatpush.msrb.mxu3 %v3110_v2  ;;  %v3128_v2 = vld [vmem:[#allocation35_spill] sm:$0xff] }
 0x2db   :  { %763 = vmatpush.msrb.mxu0 %v3111_v18  ;;  %870 = vmatpush.msrb.mxu3 %v3112_v5  ;;  %v3130_v5 = vld [vmem:[#allocation36_spill] sm:$0xff] }
 0x2dd   :  { %764 = vmatpush.msrb.mxu0 %v3113_v21  ;;  %871 = vmatpush.msrb.mxu3 %v3114_v6  ;;  %v3131_v6 = vld [vmem:[#allocation37_spill] sm:$0xff] }
 0x2de   :  { %1724 = vmatmul.msk.f32.vlgmr.msra.gmra.mxu3 %vm654_vm3, %v1723_v32  ;;  %v3129_v32 = vld [vmem:[#allocation34_spill] sm:$0xff] }
 0x2df   :  { %765 = vmatpush.msrb.mxu0 %v3115_v14  ;;  %872 = vmatpush.msrb.mxu3 %v3116_v33  ;;  %v3132_v33 = vld [vmem:[#allocation38_spill] sm:$0xff] }
 0x2e1   :  { %766 = vmatpush.msrb.mxu0 %v3117_v35  ;;  %873 = vmatpush.msrb.mxu3 %v3118_v10  ;;  %v3133_v10 = vld [vmem:[#allocation39_spill] sm:$0xff] }
 0x2e3   :  { %767 = vmatpush.msrb.mxu0 %v3119_v12  ;;  %874 = vmatpush.msrb.mxu3 %v3120_v22  ;;  %v3134_v22 = vld [vmem:[#allocation40_spill] sm:$0xff] }
 0x2e5   :  { %768 = vmatpush.msrb.mxu0 %v3121_v26  ;;  %875 = vmatpush.msrb.mxu3 %v3122_v30  ;;  %v3135_v30 = vld [vmem:[#allocation41_spill] sm:$0xff] }
 0x2e7   :  { %769 = vmatpush.msrb.mxu0 %v3123_v53  ;;  %876 = vmatpush.msrb.mxu3 %v3124_v54  ;;  %v3136_v54 = vld [vmem:[#allocation42_spill] sm:$0xff] }
 0x2e9   :  { %770 = vmatpush.msrb.mxu0 %v3125_v55  ;;  %877 = vmatpush.msrb.mxu3 %v3126_v56  ;;  %v3137_v56 = vld [vmem:[#allocation43_spill] sm:$0xff] }
 0x2eb   :  { %771 = vmatpush.msrb.mxu0 %v3127_v59  ;;  %878 = vmatpush.msrb.mxu3 %v3128_v2  ;;  %v3138_v2 = vld [vmem:[#allocation49_spill] sm:$0xff] }
 0x2ed   :  { %772 = vmatpush.msrb.mxu0 %v3129_v32  ;;  %879 = vmatpush.msrb.mxu3 %v3130_v5  ;;  %v3140_v5 = vld [vmem:[#allocation57_spill] sm:$0xff] }
 0x2ef   :  { %909 = vmatpush.msra.mxu0 %v2568_v15  ;;  %880 = vmatpush.msrb.mxu3 %v3131_v6  ;;  %v3142_v6 = vld [vmem:[#allocation65_spill] sm:$0xff] }
 0x2f1   :  { %881 = vmatpush.msrb.mxu3 %v3132_v33  ;;  %v3143_v33 = vld [vmem:[#allocation68_spill] sm:$0xff] }
 0x2f3   :  { %882 = vmatpush.msrb.mxu3 %v3133_v10  ;;  %v3144_v10 = vld [vmem:[#allocation71_spill] sm:$0xff] }
 0x2f5   :  { %883 = vmatpush.msrb.mxu3 %v3134_v22  ;;  %v3145_v22 = vld [vmem:[#allocation74_spill] sm:$0xff] }
 0x2f7   :  { %1006 = vmatpush.msra.mxu3 %v3135_v30  ;;  %v3146_v30 = vld [vmem:[#allocation77_spill] sm:$0xff] }
 0x2f9   :  { %1007 = vmatpush.msra.mxu3 %v3136_v54  ;;  %v3147_v54 = vld [vmem:[#allocation79_spill] sm:$0xff] }
 0x2fb   :  { %1008 = vmatpush.msra.mxu3 %v3137_v56  ;;  %v3148_v56 = vld [vmem:[#allocation83_spill] sm:$0xff] }
 0x2fd   :  { %1009 = vmatpush.msra.mxu3 %v3138_v2 }
 0x2ff   :  { %1010 = vmatpush.msra.mxu3 %v3139_v4 }
 0x301   :  { %1011 = vmatpush.msra.mxu3 %v3140_v5 }
 0x303   :  { %1012 = vmatpush.msra.mxu3 %v3141_v8 }
 0x305   :  { %1013 = vmatpush.msra.mxu3 %v3142_v6 }
 0x307   :  { %1014 = vmatpush.msra.mxu3 %v3143_v33 }
 0x309   :  { %1015 = vmatpush.msra.mxu3 %v3144_v10  ;;  %v3160_v10 = vld [vmem:[#allocation80_spill] sm:$0xff] }
 0x30b   :  { %1016 = vmatpush.msra.mxu3 %v3145_v22 }
 0x30d   :  { %1017 = vmatpush.msra.mxu3 %v3146_v30  ;;  %v1725_v30 = vld [vmem:[%s2861_s7 + $0x20] sm:$0xff] }
 0x30f   :  { %1018 = vmatpush.msra.mxu3 %v3147_v54  ;;  %v3159_v54 = vld [vmem:[#allocation78_spill] sm:$0xff] }
 0x311   :  { %1019 = vmatpush.msra.mxu3 %v2407_v20  ;;  %v3155_v20 = vld [vmem:[#allocation66_spill] sm:$0xff] }
 0x313   :  { %1020 = vmatpush.msra.mxu3 %v3148_v56  ;;  %v3151_v56 = vld [vmem:[#allocation50_spill] sm:$0xff] }
 0x315   :  { %1021 = vmatpush.msra.mxu3 %v2423_v61 }
 0x34b   :  { %v729_v17 = vpop.f32.mrf.mxu0 }
 0x34c   :  { %793 = vmatmul.f32.vlgmr.msra.gmra.mxu1 %v729_v17  ;;  %v1727_v17 = vld [vmem:[%s2861_s7 + $0x28] sm:$0xff] }
 0x34d   :  { %1093 = vmatpush.msra.mxu1 %v2568_v15 }
 0x351   :  { %v754_v25 = vpop.f32.mrf.mxu3 }
 0x352   :  { %773 = vmatmul.f32.vlgmr.msrb.gmra.mxu0 %v754_v25  ;;  %v1729_v25 = vld [vmem:[%s2861_s7 + $0x30] sm:$0xff] }
 0x353   :  { %955 = vmatpush.msrb.mxu0 %v2568_v15 }
 0x359   :  { %v819_v22 = vpop.f32.mrf.mxu3 }
 0x35a   :  { %838 = vmatmul.f32.vlgmr.msra.gmra.mxu2 %v819_v22  ;;  %1726 = vmatmul.msk.f32.vlgmr.msra.gmra.mxu0 %vm654_vm3, %v1725_v30  ;;  %v3149_v22 = vld [vmem:[#allocation44_spill] sm:$0xff]  ;;  %v3150_v30 = vld [vmem:[#allocation45_spill] sm:$0xff] }
 0x35b   :  { %1001 = vmatpush.msra.mxu0 %v2568_v15  ;;  %1149 = vmatpush.msra.mxu2 %v2558_v24  ;;  %v1731_v24 = vld [vmem:[%s2861_s7 + $0x38] sm:$0xff] }
 0x361   :  { %v865_v61 = vpop.f32.mrf.mxu3 }
 0x362   :  { %884 = vmatmul.f32.vlgmr.msrb.gmra.mxu3 %v865_v61  ;;  %1728 = vmatmul.msk.f32.vlgmr.msrb.gmra.mxu0 %vm654_vm3, %v1727_v17  ;;  %v3152_v61 = vld [vmem:[#allocation54_spill] sm:$0xff] }
 0x363   :  { %1047 = vmatpush.msrb.mxu0 %v2568_v15  ;;  %v3153_v15 = vld [vmem:[#allocation58_spill] sm:$0xff] }
 0x364   :  { %v3154_v17 = vld [vmem:[#allocation62_spill] sm:$0xff] }
 0x36a   :  { %1730 = vmatmul.msk.f32.vlgmr.msra.gmra.mxu0 %vm654_vm3, %v1729_v25  ;;  %v3156_v25 = vld [vmem:[#allocation69_spill] sm:$0xff] }
 0x36b   :  { %1052 = vmatpush.msra.mxu0 %v3149_v22  ;;  %v3157_v22 = vld [vmem:[#allocation72_spill] sm:$0xff] }
 0x36d   :  { %1053 = vmatpush.msra.mxu0 %v3150_v30  ;;  %v3158_v30 = vld [vmem:[#allocation75_spill] sm:$0xff] }
 0x36f   :  { %1054 = vmatpush.msra.mxu0 %v3151_v56  ;;  %v3161_v56 = vld [vmem:[#allocation82_spill] sm:$0xff] }
 0x371   :  { %1055 = vmatpush.msra.mxu0 %v3152_v61  ;;  %v3162_v61 = vld [vmem:[#allocation84_spill] sm:$0xff] }
 0x372   :  { %1732 = vmatmul.msk.f32.vlgmr.msrb.gmra.mxu0 %vm654_vm3, %v1731_v24  ;;  %v3163_v24 = vld [vmem:[#allocation88_spill] sm:$0xff] }
 0x373   :  { %1056 = vmatpush.msra.mxu0 %v3153_v15  ;;  %v3164_v15 = vld [vmem:[#allocation90_spill] sm:$0xff] }
 0x375   :  { %1057 = vmatpush.msra.mxu0 %v3154_v17  ;;  %v1769_v17 = vld [vmem:[#allocation2 + $0xf8] sm:$0xff] }
 0x377   :  { %1058 = vmatpush.msra.mxu0 %v3155_v20  ;;  %v1770_v20 = vld [vmem:[#allocation2 + $0xf0] sm:$0xff] }
 0x379   :  { %1059 = vmatpush.msra.mxu0 %v3156_v25  ;;  %v1771_v25 = vld [vmem:[#allocation2 + $0xe8] sm:$0xff] }
 0x37b   :  { %1060 = vmatpush.msra.mxu0 %v3157_v22  ;;  %v1772_v22 = vld [vmem:[#allocation2 + $0xe0] sm:$0xff] }
 0x37d   :  { %1061 = vmatpush.msra.mxu0 %v3158_v30  ;;  %v1774_v30 = vld [vmem:[#allocation2 + $0x178] sm:$0xff] }
 0x37f   :  { %1062 = vmatpush.msra.mxu0 %v3159_v54 }
 0x381   :  { %1063 = vmatpush.msra.mxu0 %v3160_v10 }
 0x383   :  { %1064 = vmatpush.msra.mxu0 %v3161_v56 }
 0x385   :  { %1065 = vmatpush.msra.mxu0 %v3162_v61 }
 0x387   :  { %1066 = vmatpush.msra.mxu0 %v3163_v24 }
 0x389   :  { %1067 = vmatpush.msra.mxu0 %v3164_v15 }
 0x38b   :  { %1258 = vmatpush.msrb.mxu0 %v1769_v17  ;;  %v1775_v17 = vld [vmem:[#allocation2 + $0x170] sm:$0xff] }
 0x38d   :  { %1259 = vmatpush.msrb.mxu0 %v1770_v20  ;;  %v1776_v20 = vld [vmem:[#allocation2 + $0x168] sm:$0xff] }
 0x38f   :  { %1260 = vmatpush.msrb.mxu0 %v1771_v25  ;;  %v1777_v25 = vld [vmem:[#allocation2 + $0x160] sm:$0xff] }
 0x391   :  { %1261 = vmatpush.msrb.mxu0 %v1772_v22  ;;  %v1778_v22 = vld [vmem:[#allocation2 + $0x158] sm:$0xff] }
 0x393   :  { %1262 = vmatpush.msrb.mxu0 %v3107_v57 }
 0x395   :  { %1263 = vmatpush.msrb.mxu0 %v3109_v63  ;;  %v1119_v63 = vld [vmem:[%s2862_s8] sm:$0xff] }
 0x396   :  { %1122 = vperm.xlu1 %1763, %v1119_v63   ;;  %v1779_v63 = vld [vmem:[#allocation2 + $0x150] sm:$0xff] }
 0x397   :  { %1264 = vmatpush.msrb.mxu0 %v3111_v18 }
 0x399   :  { %1265 = vmatpush.msrb.mxu0 %v3113_v21  ;;  %v3165_v21 = vld [vmem:[#allocation85_spill] sm:$0xff] }
 0x39b   :  { %1266 = vmatpush.msrb.mxu0 %v3115_v14  ;;  %v3166_v14 = vld [vmem:[#allocation86_spill] sm:$0xff] }
 0x39d   :  { %1267 = vmatpush.msrb.mxu0 %v3117_v35  ;;  %v1733_v35 = vld [vmem:[%s2861_s7 + $0x40] sm:$0xff] }
 0x39f   :  { %1268 = vmatpush.msrb.mxu0 %v3119_v12  ;;  %v3167_v12 = vld [vmem:[#allocation89_spill] sm:$0xff] }
 0x3a1   :  { %1269 = vmatpush.msrb.mxu0 %v3121_v26 }
 0x3a3   :  { %1270 = vmatpush.msrb.mxu0 %v3123_v53  ;;  %v3168_v53 = vld [vmem:[#allocation91_spill] sm:$0xff] }
 0x3a5   :  { %1271 = vmatpush.msrb.mxu0 %v3125_v55  ;;  %v3169_v55 = vld [vmem:[#allocation92_spill] sm:$0xff] }
 0x3a7   :  { %1272 = vmatpush.msrb.mxu0 %v3127_v59  ;;  %v1773_v59 = vld [vmem:[%s3005_s1] sm:$0xf] }
 0x3a9   :  { %1273 = vmatpush.msrb.mxu0 %v3129_v32 }
 0x3cf   :  { %v2688_v57 = vpop.f32.mrf.mxu0 }
 0x3d7   :  { %v911_v18 = vpop.f32.mrf.mxu0 }
 0x3d8   :  { %930 = vmatmul.f32.vlgmr.msrb.gmra.mxu1 %v911_v18  ;;  %v1780_v18 = vld [vmem:[#allocation2 + $0x148] sm:$0xff] }
 0x3d9   :  { %1098 = vmatpush.msrb.mxu1 %v3165_v21 }
 0x3db   :  { %1099 = vmatpush.msrb.mxu1 %v3166_v14 }
 0x3dd   :  { %1100 = vmatpush.msrb.mxu1 %v3167_v12 }
 0x3df   :  { %v957_v26 = vpop.f32.mrf.mxu0  ;;  %1101 = vmatpush.msrb.mxu1 %v3168_v53 }
 0x3e0   :  { %976 = vmatmul.f32.vlgmr.msrb.gmra.mxu2 %v957_v26  ;;  %1734 = vmatmul.msk.f32.vlgmr.msra.gmra.mxu1 %vm654_vm3, %v1733_v35  ;;  %v1781_v35 = vld [vmem:[#allocation2 + $0x140] sm:$0xff] }
 0x3e1   :  { %1102 = vmatpush.msrb.mxu1 %v3169_v55  ;;  %1736 = vmatpush.msk.msrb.mxu2 %vm79_vm0, %v1773_v59  ;;  %v1202_v26 = vld [vmem:[%s2866_s12] sm:$0xff]  ;;  %s1679_s12 = sshll.u32 %s2871_s17, 4  ;;  %s1680_s12 = int_to_ptr.hbm [resolvable:$true] %s1679_s12 }
 0x3e2   :  { %1205 = vperm.xlu1 %1763, %v1202_v26   ;;  %v1783_v26 = vld [vmem:[#allocation2 + $0x70] sm:$0xff] }
 0x3e3   :  { %1103 = vmatpush.msrb.mxu1 %v2445_v16 }
 0x3e5   :  { %1104 = vmatpush.msrb.mxu1 %v2449_v0 }
 0x3e7   :  { %v1003_v32 = vpop.f32.mrf.mxu0  ;;  %1105 = vmatpush.msrb.mxu1 %v2453_v11 }
 0x3e8   :  { %1022 = vmatmul.f32.vlgmr.msra.gmra.mxu3 %v1003_v32 }
 0x3e9   :  { %1106 = vmatpush.msrb.mxu1 %v2459_v13 }
 0x3eb   :  { %1107 = vmatpush.msrb.mxu1 %v2463_v7 }
 0x3ed   :  { %1108 = vmatpush.msrb.mxu1 %v2467_v9 }
 0x3ef   :  { %v1049_v54 = vpop.f32.mrf.mxu0  ;;  %1109 = vmatpush.msrb.mxu1 %v2501_v19 }
 0x3f0   :  { %1068 = vmatmul.f32.vlgmr.msra.gmra.mxu0 %v1049_v54 }
 0x3f1   :  { %1110 = vmatpush.msrb.mxu1 %v2504_v23 }
 0x3f3   :  { %1111 = vmatpush.msrb.mxu1 %v2506_v27 }
 0x3f5   :  { %1112 = vmatpush.msrb.mxu1 %v2509_v29 }
 0x3f7   :  { %1113 = vmatpush.msrb.mxu1 %v2513_v31 }
 0x3f9   :  { %1323 = vmatpush.msra.mxu1 %v1774_v30 }
 0x3fb   :  { %1324 = vmatpush.msra.mxu1 %v1775_v17 }
 0x3fd   :  { %1325 = vmatpush.msra.mxu1 %v1776_v20 }
 0x3ff   :  { %1326 = vmatpush.msra.mxu1 %v1777_v25 }
 0x401   :  { %1327 = vmatpush.msra.mxu1 %v1778_v22 }
 0x403   :  { %1328 = vmatpush.msra.mxu1 %v1779_v63  ;;  %v1209_v63 = vld [vmem:[%s2867_s13] sm:$0xff] }
 0x405   :  { %1329 = vmatpush.msra.mxu1 %v1780_v18  ;;  %v1740_v18 = vld [vmem:[%s2867_s13 + $0x8] sm:$0xff] }
 0x407   :  { %1330 = vmatpush.msra.mxu1 %v1781_v35  ;;  %v1782_v35 = vld [vmem:[#allocation2 + $0x78] sm:$0xff] }
 0x409   :  { %1331 = vmatpush.msra.mxu1 %v2126_v42  ;;  %v1657_v42 = vld [vmem:[%s2869_s15] sm:$0xff] }
 0x40a   :  { %1660 = vperm.xlu1 %1763, %v1657_v42   ;;  %v1784_v42 = vld [vmem:[#allocation2 + $0x68] sm:$0xff] }
 0x40b   :  { %1332 = vmatpush.msra.mxu1 %v2138_v46  ;;  %v1664_v46 = vld [vmem:[%s2870_s16] sm:$0xff] }
 0x40d   :  { %1333 = vmatpush.msra.mxu1 %v2150_v50  ;;  %v794_v50 = vpop.f32.mrf.mxu1 }
 0x40f   :  { %1334 = vmatpush.msra.mxu1 %v2177_v58  ;;  %v839_v58 = vpop.f32.mrf.mxu2 }
 0x411   :  { %1335 = vmatpush.msra.mxu1 %v2185_v60  ;;  %v795_v60 = vadd.f32 %v794_v50, %v2688_v57  ;;  %v1785_v50 = vld [vmem:[#allocation2 + $0x60] sm:$0xff] }
 0x412   :  { %1667 = vperm.xlu1 %1763, %v1664_v46   ;;  %v1742_v46 = vld [vmem:[%s2867_s13 + $0x10] sm:$0xff] }
 0x413   :  { %1336 = vmatpush.msra.mxu1 %v2189_v62  ;;  %v885_v62 = vpop.f32.mrf.mxu3 }
 0x415   :  { %1337 = vmatpush.msra.mxu1 %v2197_v1  ;;  %v842_v1 = vadd.f32 %v839_v58, %v795_v60  ;;  %v1786_v58 = vld [vmem:[#allocation2 + $0x58] sm:$0xff] }
 0x416   :  { %v1787_v60 = vld [vmem:[#allocation2 + $0x1f8] sm:$0xff] }
 0x417   :  { %1338 = vmatpush.msra.mxu1 %v2203_v3  ;;  %v888_v3 = vadd.f32 %v885_v62, %v842_v1  ;;  %v1788_v62 = vld [vmem:[#allocation2 + $0x50] sm:$0xff] }
 0x418   :  { %v1789_v1 = vld [vmem:[#allocation2 + $0x1f0] sm:$0xff] }
 0x455   :  { %v931_v59 = vpop.f32.mrf.mxu1 }
 0x456   :  { %v934_v32 = vadd.f32 %v931_v59, %v888_v3  ;;  %v1790_v3 = vld [vmem:[#allocation2 + $0x48] sm:$0xff]  ;;  %v1744_v59 = vld [vmem:[%s2867_s13 + $0x18] sm:$0xff] }
 0x45d   :  { %v1095_v54 = vpop.f32.mrf.mxu1 }
 0x45e   :  { %1114 = vmatmul.f32.vlgmr.msrb.gmra.mxu1 %v1095_v54  ;;  %v1792_v54 = vld [vmem:[#allocation2 + $0x40] sm:$0xff] }
 0x45f   :  { %1461 = vmatpush.msrb.mxu1 %v2274_v37 }
 0x461   :  { %1462 = vmatpush.msrb.mxu1 %v2278_v28  ;;  %v1130_v28 = vld [vmem:[%s2864_s10] sm:$0xff] }
 0x462   :  { %1735 = vmatmul.msk.f32.vlgmr.msra.gmra.mxu2 %vm654_vm3, %v1130_v28  ;;  %v1793_v28 = vld [vmem:[#allocation2 + $0x1e0] sm:$0xff] }
 0x463   :  { %1463 = vmatpush.msrb.mxu1 %v2284_v49  ;;  %v977_v37 = vpop.f32.mrf.mxu2 }
 0x464   :  { %v980_v49 = vadd.f32 %v977_v37, %v934_v32  ;;  %v1791_v32 = vld [vmem:[#allocation2 + $0x1e8] sm:$0xff]  ;;  %v1795_v37 = vld [vmem:[#allocation2 + $0x1d8] sm:$0xff] }
 0x465   :  { %1464 = vmatpush.msrb.mxu1 %v2288_v36  ;;  %v1129_v36 = vld [vmem:[%s2863_s9] sm:$0xff] }
 0x467   :  { %1465 = vmatpush.msrb.mxu1 %v2294_v45 }
 0x469   :  { %1466 = vmatpush.msrb.mxu1 %v3091_v34 }
 0x46a   :  { %1737 = vmatmul.msk.f32.vlgmr.msrb.gmra.mxu2 %vm75_vm1, %v1129_v36  ;;  %v1794_v36 = vld [vmem:[#allocation2 + $0x38] sm:$0xff] }
 0x46b   :  { %1467 = vmatpush.msrb.mxu1 %v3092_v38  ;;  %v1023_v45 = vpop.f32.mrf.mxu3 }
 0x46c   :  { %v1026_v34 = vadd.f32 %v1023_v45, %v980_v49  ;;  %v1796_v45 = vld [vmem:[#allocation2 + $0x30] sm:$0xff] }
 0x46d   :  { %1468 = vmatpush.msrb.mxu1 %v3093_v39  ;;  %v1069_v38 = vpop.f32.mrf.mxu0  ;;  %v1797_v49 = vld [vmem:[#allocation2 + $0x1d0] sm:$0xff] }
 0x46e   :  { %v1072_v39 = vadd.f32 %v1069_v38, %v1026_v34  ;;  %v1798_v34 = vld [vmem:[#allocation2 + $0x28] sm:$0xff] }
 0x46f   :  { %1469 = vmatpush.msrb.mxu1 %v3094_v40  ;;  %v1799_v38 = vld [vmem:[#allocation2 + $0x1c8] sm:$0xff] }
 0x471   :  { %1470 = vmatpush.msrb.mxu1 %v3095_v41 }
 0x473   :  { %1471 = vmatpush.msrb.mxu1 %v3096_v43  ;;  %v1123_v43 = vpop.permute.xlu1 %1122 }
 0x475   :  { %1472 = vmatpush.msrb.mxu1 %v3097_v44 }
 0x477   :  { %1473 = vmatpush.msrb.mxu1 %v3098_v47 }
 0x479   :  { %1474 = vmatpush.msrb.mxu1 %v3099_v48  ;;  %v1177_v48 = vld [vmem:[%s2865_s11] sm:$0xff] }
 0x47b   :  { %1475 = vmatpush.msrb.mxu1 %v3100_v51  ;;  %v1206_v25 = vpop.permute.xlu1 %1205 }
 0x47d   :  { %1476 = vmatpush.msrb.mxu1 %v3101_v52 }
 0x4db   :  { %v1115_v40 = vpop.f32.mrf.mxu1 }
 0x4dc   :  { %v1118_v41 = vadd.f32 %v1115_v40, %v1072_v39  ;;  %v1800_v39 = vld [vmem:[#allocation2 + $0x20] sm:$0xff] }
 0x4dd   :  { %v1801_v40 = vld [vmem:[#allocation2 + $0x1c0] sm:$0xff] }
 0x4de   :  { %v1125_v44 = vadd.f32 %v1123_v43, %v1118_v41  ;;  %v1802_v41 = vld [vmem:[#allocation2 + $0x18] sm:$0xff] }
 0x4df   :  { %v1803_v43 = vld [vmem:[#allocation2 + $0x1b8] sm:$0xff] }
 0x4e0   :  { %v1127_v47 = vmul.f32 0.01, %v1125_v44  ;;  %vm1126_vm4 = vcmp.ge.f32.partialorder %v1125_v44, 0.0 }
 0x4e2   :  { %v1128_v51 = vsel %vm1126_vm4, %v1125_v44, %v1127_v47  ;;  %v1804_v44 = vld [vmem:[#allocation2 + $0x10] sm:$0xff] }
 0x4e3   :  { %1196 = vmatpush.msrb.mxu3 %v1128_v51  ;;  %v1805_v47 = vld [vmem:[#allocation2 + $0x1b0] sm:$0xff]  ;;  %v1807_v51 = vld [vmem:[#allocation2 + $0x1a8] sm:$0xff] }
 0x4e4   :  { %1738 = vmatmul.msk.f32.vlgmr.msrb.gmra.mxu3 %vm654_vm3, %v1177_v48  ;;  %v1806_v48 = vld [vmem:[#allocation2 + $0x8] sm:$0xff] }
 0x4e5   :  { %v1151_v52 = vpop.f32.mrf.mxu2 }
 0x4ed   :  { %v1174_v57 = vpop.f32.mrf.mxu2 }
 0x4ee   :  { %v1175_v30 = vadd.f32 %v1174_v57, %v1151_v52  ;;  %v1808_v52 = vld [vmem:[#allocation2] sm:$0xff]  ;;  %v1809_v57 = vld [vmem:[#allocation2 + $0x278] sm:$0xff] }
 0x567   :  { %v1198_v17 = vpop.f32.mrf.mxu3 }
 0x568   :  { %v1201_v20 = vadd.f32 %v1198_v17, %v1175_v30  ;;  %v1810_v30 = vld [vmem:[#allocation2 + $0x1a0] sm:$0xff]  ;;  %v1811_v17 = vld [vmem:[#allocation2 + $0x270] sm:$0xff] }
 0x56a   :  { %v2763_v22 = vadd.f32 %v1206_v25, %v1201_v20  ;;  %v1812_v20 = vld [vmem:[#allocation2 + $0x198] sm:$0xff]  ;;  %v1813_v25 = vld [vmem:[#allocation2 + $0x268] sm:$0xff] }
 0x56c   :  { %1228 = vmatpush.msra.mxu2 %v2763_v22  ;;  %1253 = vmatpush.msra.mxu3 %v2763_v22 }
 0x56d   :  { %1410 = vmatpush.msra.mxu0 %v2763_v22  ;;  %1739 = vmatmul.msk.f32.vlgmr.msra.gmra.mxu2 %vm654_vm3, %v1209_v63  ;;  %v1814_v63 = vld [vmem:[#allocation2 + $0x190] sm:$0xff] }
 0x56e   :  { %1741 = vmatmul.msk.f32.vlgmr.msra.gmra.mxu3 %vm654_vm3, %v1740_v18  ;;  %1278 = vmatpush.msrb.mxu2 %v1782_v35  ;;  %v1815_v18 = vld [vmem:[#allocation2 + $0x260] sm:$0xff]  ;;  %v1816_v35 = vld [vmem:[#allocation2 + $0x188] sm:$0xff] }
 0x56f   :  { %1318 = vmatpush.msrb.mxu3 %v2763_v22 }
 0x570   :  { %1279 = vmatpush.msrb.mxu2 %v1783_v26  ;;  %v1817_v26 = vld [vmem:[#allocation2 + $0x258] sm:$0xff] }
 0x571   :  { %1364 = vmatpush.msra.mxu3 %v2763_v22 }
 0x572   :  { %1280 = vmatpush.msrb.mxu2 %v1784_v42  ;;  %v1818_v42 = vld [vmem:[#allocation2 + $0x180] sm:$0xff] }
 0x574   :  { %1281 = vmatpush.msrb.mxu2 %v1785_v50  ;;  %v1820_v50 = vld [vmem:[#allocation2 + $0x250] sm:$0xff] }
 0x576   :  { %1743 = vmatmul.msk.f32.vlgmr.msrb.gmra.mxu3 %vm654_vm3, %v1742_v46  ;;  %1282 = vmatpush.msrb.mxu2 %v1786_v58  ;;  %v1819_v46 = vld [vmem:[#allocation2 + $0x378] sm:$0xff]  ;;  %v1821_v58 = vld [vmem:[#allocation2 + $0x370] sm:$0xff] }
 0x577   :  { %1369 = vmatpush.msrb.mxu3 %v1787_v60  ;;  %v1822_v60 = vld [vmem:[#allocation2 + $0x248] sm:$0xff] }
 0x578   :  { %1283 = vmatpush.msrb.mxu2 %v1788_v62  ;;  %v1823_v62 = vld [vmem:[#allocation2 + $0x368] sm:$0xff] }
 0x579   :  { %1370 = vmatpush.msrb.mxu3 %v1789_v1  ;;  %v1824_v1 = vld [vmem:[#allocation2 + $0x240] sm:$0xff] }
 0x57a   :  { %1284 = vmatpush.msrb.mxu2 %v1790_v3  ;;  %v1825_v3 = vld [vmem:[#allocation2 + $0x238] sm:$0xff] }
 0x57b   :  { %1371 = vmatpush.msrb.mxu3 %v1791_v32  ;;  %v1827_v32 = vld [vmem:[#allocation2 + $0x228] sm:$0xff] }
 0x57c   :  { %1285 = vmatpush.msrb.mxu2 %v1792_v54  ;;  %v1828_v54 = vld [vmem:[#allocation2 + $0x220] sm:$0xff] }
 0x57d   :  { %1372 = vmatpush.msrb.mxu3 %v1793_v28  ;;  %v3170_v28 = vld [vmem:[#allocation51_spill] sm:$0xff] }
 0x57e   :  { %1745 = vmatmul.msk.f32.vlgmr.msra.gmra.mxu3 %vm654_vm3, %v1744_v59  ;;  %1286 = vmatpush.msrb.mxu2 %v1794_v36  ;;  %v1826_v59 = vld [vmem:[#allocation2 + $0x230] sm:$0xff]  ;;  %v3172_v36 = vld [vmem:[#allocation71_spill] sm:$0xff] }
 0x57f   :  { %1373 = vmatpush.msrb.mxu3 %v1795_v37  ;;  %v3174_v37 = vld [vmem:[#allocation74_spill] sm:$0xff] }
 0x580   :  { %1287 = vmatpush.msrb.mxu2 %v1796_v45  ;;  %v3176_v45 = vld [vmem:[#allocation77_spill] sm:$0xff] }
 0x581   :  { %1374 = vmatpush.msrb.mxu3 %v1797_v49  ;;  %v3178_v49 = vld [vmem:[#allocation81_spill] sm:$0xff] }
 0x582   :  { %1288 = vmatpush.msrb.mxu2 %v1798_v34  ;;  %v3180_v34 = vld [vmem:[#allocation87_spill] sm:$0xff] }
 0x583   :  { %1375 = vmatpush.msrb.mxu3 %v1799_v38 }
 0x584   :  { %1289 = vmatpush.msrb.mxu2 %v1800_v39  ;;  %v1746_v39 = vld [vmem:[%s2867_s13 + $0x20] sm:$0xff] }
 0x585   :  { %1376 = vmatpush.msrb.mxu3 %v1801_v40 }
 0x586   :  { %1290 = vmatpush.msrb.mxu2 %v1802_v41  ;;  %v1748_v41 = vld [vmem:[%s2867_s13 + $0x28] sm:$0xff] }
 0x587   :  { %1377 = vmatpush.msrb.mxu3 %v1803_v43 }
 0x588   :  { %1291 = vmatpush.msrb.mxu2 %v1804_v44 }
 0x589   :  { %1378 = vmatpush.msrb.mxu3 %v1805_v47 }
 0x58a   :  { %1292 = vmatpush.msrb.mxu2 %v1806_v48 }
 0x58b   :  { %1379 = vmatpush.msrb.mxu3 %v1807_v51 }
 0x58c   :  { %1293 = vmatpush.msrb.mxu2 %v1808_v52 }
 0x58d   :  { %1380 = vmatpush.msrb.mxu3 %v1810_v30 }
 0x58e   :  { %1415 = vmatpush.msra.mxu2 %v1809_v57 }
 0x58f   :  { %1381 = vmatpush.msrb.mxu3 %v1812_v20 }
 0x590   :  { %1416 = vmatpush.msra.mxu2 %v1811_v17 }
 0x591   :  { %1382 = vmatpush.msrb.mxu3 %v1814_v63 }
 0x592   :  { %1417 = vmatpush.msra.mxu2 %v1813_v25 }
 0x593   :  { %1383 = vmatpush.msrb.mxu3 %v1816_v35 }
 0x594   :  { %1418 = vmatpush.msra.mxu2 %v1815_v18 }
 0x595   :  { %1384 = vmatpush.msrb.mxu3 %v1818_v42 }
 0x596   :  { %1419 = vmatpush.msra.mxu2 %v1817_v26 }
 0x597   :  { %1507 = vmatpush.msra.mxu3 %v1819_v46 }
 0x598   :  { %1420 = vmatpush.msra.mxu2 %v1820_v50 }
 0x599   :  { %1508 = vmatpush.msra.mxu3 %v1821_v58 }
 0x59a   :  { %1421 = vmatpush.msra.mxu2 %v1822_v60 }
 0x59b   :  { %1509 = vmatpush.msra.mxu3 %v1823_v62  ;;  %v1896_v62 = vmov 128.0  }
 0x59c   :  { %1422 = vmatpush.msra.mxu2 %v1824_v1  ;;  %1765 = vrcp.f32 %v1896_v62 }
 0x59d   :  { %1510 = vmatpush.msra.mxu3 %v3138_v2  ;;  %v3171_v2 = vld [vmem:[#allocation55_spill] sm:$0xff] }
 0x59e   :  { %1423 = vmatpush.msra.mxu2 %v1825_v3 }
 0x59f   :  { %1511 = vmatpush.msra.mxu3 %v3139_v4  ;;  %v3173_v4 = vld [vmem:[#allocation59_spill] sm:$0xff] }
 0x5a0   :  { %1424 = vmatpush.msra.mxu2 %v1826_v59 }
 0x5a1   :  { %1512 = vmatpush.msra.mxu3 %v3140_v5  ;;  %v3175_v5 = vld [vmem:[#allocation63_spill] sm:$0xff] }
 0x5a2   :  { %1425 = vmatpush.msra.mxu2 %v1827_v32  ;;  %v1766_v1 = vpop.eup %1765 }
 0x5a3   :  { %1513 = vmatpush.msra.mxu3 %v3141_v8  ;;  %v3177_v8 = vld [vmem:[#allocation79_spill] sm:$0xff]  ;;  %v1633_v3 = vmul.f32 128.0, %v1766_v1  ;;  %vm1637_vm6 = vweird.f32 %v1766_v1 }
 0x5a4   :  { %1426 = vmatpush.msra.mxu2 %v1828_v54 }
 0x5a5   :  { %1514 = vmatpush.msra.mxu3 %v3142_v6  ;;  %v3179_v6 = vld [vmem:[#allocation83_spill] sm:$0xff]  ;;  %v1634_v59 = vsub.f32 1.0, %v1633_v3 }
 0x5a6   :  { %1427 = vmatpush.msra.mxu2 %v3170_v28 }
 0x5a7   :  { %1515 = vmatpush.msra.mxu3 %v3143_v33  ;;  %v1635_v32 = vmul.f32 %v1766_v1, %v1634_v59 }
 0x5a8   :  { %1428 = vmatpush.msra.mxu2 %v3171_v2 }
 0x5a9   :  { %1516 = vmatpush.msra.mxu3 %v3172_v36  ;;  %v1636_v54 = vadd.f32 %v1766_v1, %v1635_v32 }
 0x5aa   :  { %1429 = vmatpush.msra.mxu2 %v3173_v4 }
 0x5ab   :  { %1517 = vmatpush.msra.mxu3 %v3174_v37  ;;  %v1638_v28 = vsel %vm1637_vm6, %v1766_v1, %v1636_v54 }
 0x5ac   :  { %1430 = vmatpush.msra.mxu2 %v3175_v5 }
 0x5ad   :  { %1518 = vmatpush.msra.mxu3 %v3176_v45 }
 0x5af   :  { %1519 = vmatpush.msra.mxu3 %v3177_v8 }
 0x5b1   :  { %1520 = vmatpush.msra.mxu3 %v3178_v49 }
 0x5b3   :  { %1521 = vmatpush.msra.mxu3 %v3179_v6 }
 0x5b5   :  { %1522 = vmatpush.msra.mxu3 %v3180_v34 }
 0x5f0   :  { %v1230_v33 = vpop.f32.mrf.mxu2 }
 0x5f1   :  { %v1255_v38 = vpop.f32.mrf.mxu3  ;;  %1294 = vmatmul.f32.vlgmr.msrb.gmra.mxu2 %v1230_v33  ;;  %v1661_v33 = vpop.permute.xlu1 %1660 }
 0x5f2   :  { %1274 = vmatmul.f32.vlgmr.msrb.gmra.mxu0 %v1255_v38  ;;  %1594 = vmatpush.msrb.mxu2 %v2763_v22 }
 0x5f3   :  { %1456 = vmatpush.msrb.mxu0 %v2763_v22 }
 0x5f9   :  { %v1320_v40 = vpop.f32.mrf.mxu3 }
 0x5fa   :  { %1747 = vmatmul.msk.f32.vlgmr.msra.gmra.mxu0 %vm654_vm3, %v1746_v39  ;;  %1339 = vmatmul.f32.vlgmr.msra.gmra.mxu1 %v1320_v40 }
 0x5fb   :  { %1502 = vmatpush.msra.mxu0 %v2763_v22  ;;  %1599 = vmatpush.msra.mxu1 %v3165_v21  ;;  %v1750_v21 = vld [vmem:[%s2867_s13 + $0x30] sm:$0xff] }
 0x5fd   :  { %1600 = vmatpush.msra.mxu1 %v3166_v14  ;;  %v1829_v14 = vld [vmem:[#allocation2 + $0x3f8] sm:$0xff] }
 0x5ff   :  { %1601 = vmatpush.msra.mxu1 %v3167_v12  ;;  %v1830_v12 = vld [vmem:[#allocation2 + $0x3f0] sm:$0xff] }
 0x601   :  { %v1366_v43 = vpop.f32.mrf.mxu3  ;;  %1602 = vmatpush.msra.mxu1 %v3168_v53  ;;  %v1831_v53 = vld [vmem:[#allocation2 + $0x3e8] sm:$0xff] }
 0x602   :  { %1385 = vmatmul.f32.vlgmr.msrb.gmra.mxu3 %v1366_v43  ;;  %1749 = vmatmul.msk.f32.vlgmr.msrb.gmra.mxu0 %vm654_vm3, %v1748_v41 }
 0x603   :  { %1548 = vmatpush.msrb.mxu0 %v2763_v22  ;;  %1603 = vmatpush.msra.mxu1 %v3169_v55  ;;  %v1836_v55 = vld [vmem:[#allocation2 + $0x3c0] sm:$0xff]  ;;  %v1839_v22 = vld [vmem:[#allocation2 + $0x3a8] sm:$0xff] }
 0x605   :  { %1604 = vmatpush.msra.mxu1 %v2445_v16  ;;  %v1752_v16 = vld [vmem:[%s2867_s13 + $0x38] sm:$0xff] }
 0x607   :  { %1605 = vmatpush.msra.mxu1 %v2449_v0  ;;  %v1832_v0 = vld [vmem:[#allocation2 + $0x3e0] sm:$0xff] }
 0x609   :  { %1606 = vmatpush.msra.mxu1 %v2453_v11  ;;  %v1833_v11 = vld [vmem:[#allocation2 + $0x3d8] sm:$0xff] }
 0x60a   :  { %1751 = vmatmul.msk.f32.vlgmr.msra.gmra.mxu0 %vm654_vm3, %v1750_v21 }
 0x60b   :  { %1553 = vmatpush.msra.mxu0 %v1829_v14  ;;  %1607 = vmatpush.msra.mxu1 %v2459_v13  ;;  %v1834_v13 = vld [vmem:[#allocation2 + $0x3d0] sm:$0xff]  ;;  %v1668_v14 = vpop.permute.xlu1 %1667 }
 0x60d   :  { %1554 = vmatpush.msra.mxu0 %v1830_v12  ;;  %1608 = vmatpush.msra.mxu1 %v2463_v7  ;;  %v1835_v7 = vld [vmem:[#allocation2 + $0x3c8] sm:$0xff] }
 0x60f   :  { %1555 = vmatpush.msra.mxu0 %v1831_v53  ;;  %1609 = vmatpush.msra.mxu1 %v2467_v9  ;;  %v1837_v9 = vld [vmem:[#allocation2 + $0x3b8] sm:$0xff] }
 0x611   :  { %1556 = vmatpush.msra.mxu0 %v1832_v0  ;;  %1610 = vmatpush.msra.mxu1 %v2501_v19  ;;  %v1838_v19 = vld [vmem:[#allocation2 + $0x3b0] sm:$0xff] }
 0x612   :  { %1753 = vmatmul.msk.f32.vlgmr.msrb.gmra.mxu0 %vm654_vm3, %v1752_v16 }
 0x613   :  { %1557 = vmatpush.msra.mxu0 %v1833_v11  ;;  %1611 = vmatpush.msra.mxu1 %v2504_v23 }
 0x615   :  { %1558 = vmatpush.msra.mxu0 %v1834_v13  ;;  %1612 = vmatpush.msra.mxu1 %v2506_v27 }
 0x617   :  { %1559 = vmatpush.msra.mxu0 %v1835_v7  ;;  %1613 = vmatpush.msra.mxu1 %v2509_v29  ;;  %v1754_v29 = vld [vmem:[%s2867_s13 + $0x40] sm:$0xff]  ;;  %s1897_s13 = smov [#allocation5]  }
 0x619   :  { %1560 = vmatpush.msra.mxu0 %v1836_v55  ;;  %1614 = vmatpush.msra.mxu1 %v2513_v31 }
 0x61b   :  { %1561 = vmatpush.msra.mxu0 %v1837_v9 }
 0x61d   :  { %1562 = vmatpush.msra.mxu0 %v1838_v19 }
 0x61f   :  { %1563 = vmatpush.msra.mxu0 %v1839_v22 }
 0x621   :  { %1564 = vmatpush.msra.mxu0 %v3160_v10 }
 0x623   :  { %1565 = vmatpush.msra.mxu0 %v3161_v56 }
 0x625   :  { %1566 = vmatpush.msra.mxu0 %v3162_v61  ;;  %v1620_v61 = vld [vmem:[%s2868_s14] sm:$0xff]  ;;  %s1677_s14 = sshll.u32 %s1897_s13, 4  ;;  %s1678_s14 = int_to_ptr.vmem [resolvable:$true] %s1677_s14 }
 0x626   :  { %1623 = vperm.xlu2 %1764, %v1620_v61  }
 0x627   :  { %1567 = vmatpush.msra.mxu0 %v3163_v24 }
 0x629   :  { %1568 = vmatpush.msra.mxu0 %v3164_v15 }
 0x66f   :  { %v1275_v23 = vpop.f32.mrf.mxu0 }
 0x674   :  { %v1295_v24 = vpop.f32.mrf.mxu2 }
 0x675   :  { %v1296_v15 = vadd.f32 %v1295_v24, %v1275_v23 }
 0x677   :  { %v1412_v27 = vpop.f32.mrf.mxu0  ;;  %v1340_v44 = vpop.f32.mrf.mxu1 }
 0x678   :  { %1431 = vmatmul.f32.vlgmr.msra.gmra.mxu2 %v1412_v27  ;;  %v1343_v48 = vadd.f32 %v1340_v44, %v1296_v15 }
 0x67f   :  { %v1458_v31 = vpop.f32.mrf.mxu0 }
 0x680   :  { %1477 = vmatmul.f32.vlgmr.msrb.gmra.mxu1 %v1458_v31  ;;  %1755 = vmatmul.msk.f32.vlgmr.msrb.gmra.mxu2 %vm654_vm3, %v1754_v29  ;;  %v1624_v42 = vpop.permute.xlu2 %1623 }
 0x685   :  { %v1386_v47 = vpop.f32.mrf.mxu3 }
 0x686   :  { %v1389_v51 = vadd.f32 %v1386_v47, %v1343_v48 }
 0x687   :  { %v1504_v10 = vpop.f32.mrf.mxu0 }
 0x688   :  { %1523 = vmatmul.f32.vlgmr.msra.gmra.mxu3 %v1504_v10 }
 0x68f   :  { %v1550_v56 = vpop.f32.mrf.mxu0 }
 0x690   :  { %1569 = vmatmul.f32.vlgmr.msra.gmra.mxu0 %v1550_v56 }
 0x6fb   :  { %v1432_v52 = vpop.f32.mrf.mxu2 }
 0x6fc   :  { %v1435_v57 = vadd.f32 %v1432_v52, %v1389_v51 }
 0x6fd   :  { %v1478_v17 = vpop.f32.mrf.mxu1 }
 0x6fe   :  { %v1481_v25 = vadd.f32 %v1478_v17, %v1435_v57 }
 0x703   :  { %v1596_v30 = vpop.f32.mrf.mxu2 }
 0x704   :  { %1615 = vmatmul.f32.vlgmr.msra.gmra.mxu1 %v1596_v30 }
 0x70b   :  { %v1524_v20 = vpop.f32.mrf.mxu3 }
 0x70c   :  { %v1527_v63 = vadd.f32 %v1524_v20, %v1481_v25 }
 0x70d   :  { %v1570_v18 = vpop.f32.mrf.mxu0 }
 0x70e   :  { %v1573_v35 = vadd.f32 %v1570_v18, %v1527_v63 }
 0x781   :  { %v1616_v26 = vpop.f32.mrf.mxu1 }
 0x782   :  { %v1619_v46 = vadd.f32 %v1616_v26, %v1573_v35 }
 0x784   :  { %v1626_v50 = vadd.f32 %v1624_v42, %v1619_v46 }
 0x786   :  { %vm1627_vm5 = vcmp.ge.f32.partialorder %v1626_v50, 0.0  ;;  %v1628_v58 = vmul.f32 0.01, %v1626_v50 }
 0x788   :  { %v1629_v60 = vsel %vm1627_vm5, %v1626_v50, %v1628_v58 }
 0x789   :  { %1630 = vadd.xlane.f32.xlu2 %v1629_v60 }
 0x7fc   :  { %v1631_v2 = vpop.xlane.xlu2 %1630 }
 0x7fd   :  { %v1639_v36 = vmul.f32 %v1638_v28, %v1631_v2 }
 0x7ff   :  { %v1640_v4 = vsub.f32 %v1629_v60, %v1639_v36 }
 0x801   :  { %v1641_v37 = vmul.f32 %v1640_v4, %v1640_v4 }
 0x803   :  { %1642 = vadd.xlane.f32.xlu0 %v1641_v37 }
 0x876   :  { %v1643_v5 = vpop.xlane.xlu0 %1642 }
 0x877   :  { %v1644_v45 = vmul.f32 %v1643_v5, %v1638_v28 }
 0x879   :  { %v1645_v8 = vadd.f32 1e-05, %v1644_v45 }
 0x87b   :  { %1767 = vrsqrt.f32 %v1645_v8  ;;  %vm1652_vm8 = vweird.f32 %v1645_v8 }
 0x881   :  { %v1768_v49 = vpop.eup %1767 }
 0x882   :  { %v1647_v6 = vmul.f32 %v1768_v49, %v1645_v8  ;;  %vm1653_vm7 = vweird.f32 %v1768_v49 }
 0x883   :  { %vm1654_vm9 = vmor %vm1652_vm8, %vm1653_vm7 }
 0x884   :  { %v1648_v34 = vmul.f32 %v1768_v49, %v1647_v6 }
 0x886   :  { %v1649_v38 = vmul.f32 0.5, %v1648_v34 }
 0x888   :  { %v1650_v39 = vsub.f32 1.5, %v1649_v38 }
 0x88a   :  { %v1651_v40 = vmul.f32 %v1768_v49, %v1650_v39 }
 0x88c   :  { %v1655_v41 = vsel %vm1654_vm9, %v1768_v49, %v1651_v40 }
 0x88d   :  { %v1656_v43 = vmul.f32 %v1655_v41, %v1640_v4 }
 0x88f   :  { %v1663_v21 = vmul.f32 %v1661_v33, %v1656_v43 }
 0x891   :  { %v1670_v12 = vadd.f32 %v1668_v14, %v1663_v21 }
 0x893   :  { %1671 = vst [vmem:[#allocation5] sm:$0xff] %v1670_v12 }
 0x894   :  { %1682 = dma.vmem_to_hbm [thread:$0]  %s1678_s14, 128, %s1680_s12, [#allocation4]  }
 0x895   :  { %1890 = dma.done.wait [#allocation4], 128  }
 0x896   :  { %1891 = vsyncadd [#allocation4], 4294967168 }
 0x897   :  { %1687 = vsyncpa [#allocation3], 1 }
 0x898   :  { %1688 = vsyncpa [#allocation4], 1 }

</bundles_post_ra>
